<compile_context>
chip_gen: v5e
topology: v5e:2x2
jax: 0.10.0
libtpu: 0.0.40
codegen_flags: <defaults>
</compile_context>

<pallas_src>
import functools
import math

import jax
import jax.numpy as jnp
from jax.experimental import pallas as pl
from jax.experimental.pallas import tpu as pltpu

LN_EPS = 1e-5
NEG_BIG = -1e30          # finite "minus infinity" for the causal mask
MLP_CHUNK = 512          # lanes of the 4C hidden dim processed per fori step


# ---------------------------------------------------------------------------
# Per-generation VMEM / tile budgets
# ---------------------------------------------------------------------------
def _vmem_budget():
    """Returns (vmem_limit_bytes, lm_head_vocab_tile) for this TPU generation."""
    try:
        cap = pltpu.get_tpu_info().vmem_capacity_bytes
    except Exception:
        cap = 64 * 1024 * 1024
    if cap >= 128 * 1024 * 1024:          # v5e / v6e: 128 MiB physical VMEM
        return 100 * 1024 * 1024, 4096
    return 48 * 1024 * 1024, 2048         # v7x: 64 MiB physical VMEM


def _compiler_params(dim_sems):
    limit, _ = _vmem_budget()
    return pltpu.CompilerParams(dimension_semantics=dim_sems,
                                vmem_limit_bytes=limit)


def _vmem_full():
    # Untiled operand resident in VMEM for the whole call (single-buffered).
    return pl.BlockSpec(memory_space=pltpu.MemorySpace.VMEM)


# ---------------------------------------------------------------------------
# In-kernel helpers
# ---------------------------------------------------------------------------
def _layer_norm(x, g, b):
    mu = jnp.mean(x, axis=-1, keepdims=True)
    var = jnp.mean((x - mu) ** 2, axis=-1, keepdims=True)
    return (x - mu) * jax.lax.rsqrt(var + LN_EPS) * g + b


def _erf(x):
    # Abramowitz & Stegun 7.1.26 (|err| <= 1.5e-7); avoids relying on an
    # erf lowering rule inside Mosaic.
    p = 0.3275911
    a1, a2, a3, a4, a5 = (0.254829592, -0.284496736, 1.421413741,
                          -1.453152027, 1.061405429)
    sgn = jnp.where(x >= 0.0, 1.0, -1.0)
    ax = jnp.abs(x)
    t = 1.0 / (1.0 + p * ax)
    poly = ((((a5 * t + a4) * t + a3) * t + a2) * t + a1) * t
    return sgn * (1.0 - poly * jnp.exp(-ax * ax))


def _gelu_exact(x):
    # PyTorch nn.GELU() default (erf form).
    return 0.5 * x * (1.0 + _erf(x * (1.0 / math.sqrt(2.0))))


# ---------------------------------------------------------------------------
# Kernel 1: LayerNorm-1 + fused QKV projection
# ---------------------------------------------------------------------------
def qkv_kernel(x_ref, g_ref, b_ref, w_ref, bias_ref, o_ref):
    h1 = _layer_norm(x_ref[...].astype(jnp.float32), g_ref[...], b_ref[...])
    o_ref[...] = (jnp.dot(h1.astype(jnp.bfloat16), w_ref[...],
                          preferred_element_type=jnp.float32)
                  + bias_ref[...]).astype(o_ref.dtype)


def ln_qkv_projection(x, ln_g, ln_b, w_qkv, b_qkv):
    B, T, C = x.shape
    C3 = w_qkv.shape[1]
    return pl.pallas_call(
        qkv_kernel,
        out_shape=jax.ShapeDtypeStruct((B, T, C3), jnp.bfloat16),
        grid=(B,),
        in_specs=[pl.BlockSpec((None, T, C), lambda b: (b, 0, 0)),
                  _vmem_full(), _vmem_full(), _vmem_full(), _vmem_full()],
        out_specs=pl.BlockSpec((None, T, C3), lambda b: (b, 0, 0)),
        compiler_params=_compiler_params(("parallel",)),
        cost_estimate=pl.CostEstimate(
            flops=2 * B * T * C * C3,
            transcendentals=0,
            bytes_accessed=int(C * C3 * 2 + B * T * (C + C3) * 2)),
    )(x, ln_g, ln_b, w_qkv, b_qkv)


# ---------------------------------------------------------------------------
# Kernel 2: causal self-attention, tiled over query blocks
# ---------------------------------------------------------------------------
def attn_kernel(q_ref, k_ref, v_ref, o_ref, *, scale, q_blk):
    qi = pl.program_id(1)
    q = q_ref[...]                                   # (H, q_blk, D) bf16
    k = k_ref[...]                                   # (H, T, D)     bf16
    v = v_ref[...]
    tk = k.shape[1]

    s = jnp.einsum('hqd,hkd->hqk', q, k,
                   preferred_element_type=jnp.float32) * scale    # (H,q_blk,T)
    row = jax.lax.broadcasted_iota(jnp.int32, (q_blk, tk), 0) + qi * q_blk
    col = jax.lax.broadcasted_iota(jnp.int32, (q_blk, tk), 1)
    s = jnp.where((row >= col)[None, :, :], s, NEG_BIG)

    m = jnp.max(s, axis=-1, keepdims=True)
    e = jnp.exp(s - m)
    p = (e * pl.reciprocal(jnp.sum(e, axis=-1, keepdims=True), approx=True)
         ).astype(q.dtype)
    o_ref[...] = jnp.einsum('hqk,hkd->hqd', p, v,
                            preferred_element_type=jnp.float32).astype(o_ref.dtype)


def causal_attention(q, k, v):
    B, H, T, D = q.shape
    if T % 256 == 0:
        q_blk = 256
    elif T % 128 == 0:
        q_blk = 128
    else:
        q_blk = T
    scale = 1.0 / math.sqrt(D)
    return pl.pallas_call(
        functools.partial(attn_kernel, scale=scale, q_blk=q_blk),
        out_shape=jax.ShapeDtypeStruct((B, H, T, D), jnp.bfloat16),
        grid=(B, T // q_blk),
        in_specs=[pl.BlockSpec((None, H, q_blk, D), lambda b, i: (b, 0, i, 0)),
                  pl.BlockSpec((None, H, T, D), lambda b, i: (b, 0, 0, 0)),
                  pl.BlockSpec((None, H, T, D), lambda b, i: (b, 0, 0, 0))],
        out_specs=pl.BlockSpec((None, H, q_blk, D), lambda b, i: (b, 0, i, 0)),
        compiler_params=_compiler_params(("parallel", "parallel")),
        cost_estimate=pl.CostEstimate(
            flops=4 * B * H * T * T * D,
            transcendentals=B * H * T * T,
            bytes_accessed=int(4 * B * H * T * D * 2)),
    )(q, k, v)
    # TODO(synk): online-softmax over key blocks for very long T (key axis is
    # currently fully resident per query block).


# ---------------------------------------------------------------------------
# Kernel 3: attn output projection + residual + LayerNorm-2 + chunked MLP
# ---------------------------------------------------------------------------
def proj_mlp_kernel(x_ref, y_ref, wp_ref, bp_ref, g2_ref, b2_ref,
                    wfc_ref, bfc_ref, wmp_ref, bmp_ref, o_ref, acc_ref,
                    *, mlp_chunk):
    x = x_ref[...].astype(jnp.float32)
    # head reduction folded into a single (T,C)@(C,C) MXU matmul
    x = x + jnp.dot(y_ref[...], wp_ref[...],
                    preferred_element_type=jnp.float32) + bp_ref[...]
    h2 = _layer_norm(x, g2_ref[...], b2_ref[...]).astype(jnp.bfloat16)

    acc_ref[...] = x + bmp_ref[...]                  # residual + mlp c_proj bias

    h4 = wfc_ref.shape[1]
    chunk = mlp_chunk if (mlp_chunk <= h4 and h4 % mlp_chunk == 0) else h4
    n_chunks = h4 // chunk

    def body(ci, carry):
        lo = pl.multiple_of(ci * chunk, chunk)
        hc = (jnp.dot(h2, wfc_ref[:, pl.ds(lo, chunk)],
                      preferred_element_type=jnp.float32)
              + bfc_ref[:, pl.ds(lo, chunk)])
        hc = _gelu_exact(hc).astype(jnp.bfloat16)
        acc_ref[...] += jnp.dot(hc, wmp_ref[pl.ds(lo, chunk), :],
                                preferred_element_type=jnp.float32)
        return carry

    jax.lax.fori_loop(0, n_chunks, body, 0, unroll=True)
    o_ref[...] = acc_ref[...].astype(o_ref.dtype)


def proj_mlp(x, y, wp, bp, g2, b2, wfc, bfc, wmp, bmp):
    B, T, C = x.shape
    H4 = wfc.shape[1]
    return pl.pallas_call(
        functools.partial(proj_mlp_kernel, mlp_chunk=MLP_CHUNK),
        out_shape=jax.ShapeDtypeStruct((B, T, C), jnp.bfloat16),
        grid=(B,),
        in_specs=[pl.BlockSpec((None, T, C), lambda b: (b, 0, 0)),
                  pl.BlockSpec((None, T, C), lambda b: (b, 0, 0)),
                  _vmem_full(), _vmem_full(), _vmem_full(), _vmem_full(),
                  _vmem_full(), _vmem_full(), _vmem_full(), _vmem_full()],
        out_specs=pl.BlockSpec((None, T, C), lambda b: (b, 0, 0)),
        scratch_shapes=[pltpu.VMEM((T, C), jnp.float32)],
        compiler_params=_compiler_params(("parallel",)),
        cost_estimate=pl.CostEstimate(
            flops=2 * B * T * C * (C + 2 * H4),
            transcendentals=B * T * H4,
            bytes_accessed=int((C * C + 2 * C * H4) * 2 + 3 * B * T * C * 2)),
    )(x, y, wp, bp, g2, b2, wfc, bfc, wmp, bmp)


# ---------------------------------------------------------------------------
# Transformer block = the three kernels + XLA-side head plumbing
# ---------------------------------------------------------------------------
def transformer_block(x, layer, n_head):
    B, T, C = x.shape
    H = n_head
    D = C // H
    (ln1_g, ln1_b, w_qkv, b_qkv, w_aproj, b_aproj,
     ln2_g, ln2_b, w_fc, b_fc, w_mproj, b_mproj) = layer

    qkv = ln_qkv_projection(x, ln1_g, ln1_b, w_qkv, b_qkv)        # (B, T, 3C)
    q, k, v = jnp.split(qkv, 3, axis=-1)                          # C-aligned split

    def to_heads(t):   # matches torch .view(B,T,H,D).transpose(1,2)
        return jnp.transpose(t.reshape(B, T, H, D), (0, 2, 1, 3))

    y = causal_attention(to_heads(q), to_heads(k), to_heads(v))   # (B, H, T, D)
    y = jnp.transpose(y, (0, 2, 1, 3)).reshape(B, T, C)           # head merge

    return proj_mlp(x, y, w_aproj, b_aproj, ln2_g, ln2_b,
                    w_fc, b_fc, w_mproj, b_mproj)
    # TODO(synk): stack per-layer weights and prefetch layer l+1's weights
    # while layer l computes (cross-call / layer-grid pipelining).


# ---------------------------------------------------------------------------
# Final LayerNorm (hoisted) + weight-tied lm_head (last token only)
# ---------------------------------------------------------------------------
def final_ln_kernel(x_ref, g_ref, b_ref, o_ref):
    o_ref[...] = _layer_norm(x_ref[...].astype(jnp.float32),
                             g_ref[...], b_ref[...]).astype(o_ref.dtype)


def final_layernorm(x_last, g, b):
    B, C = x_last.shape
    limit, _ = _vmem_budget()
    return pl.pallas_call(
        final_ln_kernel,
        out_shape=jax.ShapeDtypeStruct((B, C), jnp.bfloat16),
        compiler_params=pltpu.CompilerParams(vmem_limit_bytes=limit),
    )(x_last, g, b)


def lm_head_kernel(x_ref, w_ref, o_ref):
    o_ref[...] = jnp.dot(x_ref[...], w_ref[...],
                         preferred_element_type=jnp.float32)


def lm_head(xn, w_lm_t):
    B, C = xn.shape
    V = w_lm_t.shape[1]
    limit, tv = _vmem_budget()
    tv = min(tv, V)
    n_tiles = pl.cdiv(V, tv)
    if n_tiles >= 3:
        # pure weight streaming -> deeper pipeline on the weight tiles
        w_spec = pl.BlockSpec((C, tv), lambda j: (0, j),
                              pipeline_mode=pl.Buffered(3))
    else:
        w_spec = pl.BlockSpec((C, tv), lambda j: (0, j))
    return pl.pallas_call(
        lm_head_kernel,
        out_shape=jax.ShapeDtypeStruct((B, V), jnp.float32),
        grid=(n_tiles,),
        in_specs=[_vmem_full(), w_spec],
        out_specs=pl.BlockSpec((B, tv), lambda j: (0, j)),
        compiler_params=pltpu.CompilerParams(
            dimension_semantics=("parallel",), vmem_limit_bytes=limit),
        cost_estimate=pl.CostEstimate(
            flops=2 * B * C * V,
            transcendentals=0,
            bytes_accessed=int(C * V * 2 + B * C * 2 + B * V * 4)),
    )(xn, w_lm_t)


# ---------------------------------------------------------------------------
# Parameter construction (deterministic, matches nn.Module shapes / tying)
# ---------------------------------------------------------------------------
def init_params(key, vocab_size, block_size, n_layer, n_head, n_embd):
    C = n_embd
    std = 0.02
    keys = jax.random.split(key, 2 + 4 * n_layer)

    wte = jax.random.normal(keys[0], (vocab_size, C), jnp.float32) * std
    wpe = jax.random.normal(keys[1], (block_size, C), jnp.float32) * std

    blocks = []
    for l in range(n_layer):
        k0, k1, k2, k3 = keys[2 + 4 * l: 6 + 4 * l]
        # torch Linear weights are (out, in); store pre-transposed (in, out).
        w_qkv = (jax.random.normal(k0, (3 * C, C), jnp.float32) * std).T   # (C, 3C) [Q|K|V]
        w_aproj = (jax.random.normal(k1, (C, C), jnp.float32) * std).T     # (C, C)
        w_fc = (jax.random.normal(k2, (4 * C, C), jnp.float32) * std).T    # (C, 4C)
        w_mproj = (jax.random.normal(k3, (C, 4 * C), jnp.float32) * std).T  # (4C, C)
        blocks.append([
            jnp.ones((1, C), jnp.float32), jnp.zeros((1, C), jnp.float32),    # ln_1
            w_qkv.astype(jnp.bfloat16), jnp.zeros((1, 3 * C), jnp.float32),   # c_attn
            w_aproj.astype(jnp.bfloat16), jnp.zeros((1, C), jnp.float32),     # attn c_proj
            jnp.ones((1, C), jnp.float32), jnp.zeros((1, C), jnp.float32),    # ln_2
            w_fc.astype(jnp.bfloat16), jnp.zeros((1, 4 * C), jnp.float32),    # c_fc
            w_mproj.astype(jnp.bfloat16), jnp.zeros((1, C), jnp.float32),     # mlp c_proj
        ])

    return dict(
        wte=wte.astype(jnp.bfloat16),            # (V, C) embedding table
        wte_t=wte.T.astype(jnp.bfloat16),        # (C, V) pre-transposed, weight-tied head
        wpe=wpe.astype(jnp.bfloat16),
        blocks=blocks,
        ln_f_g=jnp.ones((1, C), jnp.float32),
        ln_f_b=jnp.zeros((1, C), jnp.float32),
    )


# ---------------------------------------------------------------------------
# Full GPT forward (inference path: targets=None -> logits on last token)
# ---------------------------------------------------------------------------
def gpt_forward(idx, params, n_head):
    B, T = idx.shape
    tok_emb = params["wte"][idx]                     # (B, T, C) gather (XLA glue)
    pos_emb = params["wpe"][:T][None, :, :]          # (1, T, C)
    x = (tok_emb + pos_emb).astype(jnp.bfloat16)     # dropout(p) treated as eval identity

    for layer in params["blocks"]:
        x = transformer_block(x, layer, n_head)

    x_last = x[:, -1, :]                             # (B, C)
    xn = final_layernorm(x_last, params["ln_f_g"], params["ln_f_b"])
    # weight tying: lm_head.weight == wte.weight  ->  logits = ln_f(x) @ wte^T
    logits = lm_head(xn, params["wte_t"])
    return logits[:, None, :]                        # (B, 1, vocab_size)
    # TODO(synk): training path (targets != None) with full-sequence logits
    # and cross-entropy loss not implemented.


# ---------------------------------------------------------------------------
if __name__ == "__main__":
    # small GPT config
    vocab_size = 64
    block_size = 16
    n_layer = 2
    n_head = 4
    n_embd = 32

    key = jax.random.PRNGKey(0)
    k_param, k_idx = jax.random.split(key)
    params = init_params(k_param, vocab_size, block_size, n_layer, n_head, n_embd)

    B, T = 2, 8
    idx = jax.random.randint(k_idx, (B, T), 0, vocab_size, dtype=jnp.int32)

    fwd = jax.jit(gpt_forward, static_argnums=(2,))
    logits = fwd(idx, params, n_head)
    logits = jax.block_until_ready(logits)
    assert logits.shape == (B, 1, vocab_size)
    assert logits.dtype == jnp.float32
    print("KERNEL_OK")
</pallas_src>

<mosaic_0001>
module attributes {stable_mosaic.version = 11 : i64} {
  func.func @qkv_kernel(%arg0: i32, %arg1: memref<1x8x32xbf16, #tpu.memory_space<vmem>>, %arg2: memref<1x32xf32, #tpu.memory_space<vmem>>, %arg3: memref<1x32xf32, #tpu.memory_space<vmem>>, %arg4: memref<32x96xbf16, #tpu.memory_space<vmem>>, %arg5: memref<1x96xf32, #tpu.memory_space<vmem>>, %arg6: memref<1x8x96xbf16, #tpu.memory_space<vmem>>) attributes {dimension_semantics = [#tpu.dimension_semantics<parallel>], iteration_bounds = array<i64: 2>, scalar_prefetch = 0 : i64, scratch_operands = 0 : i64, tpu.core_type = #tpu.core_type<tc>, window_params = [{transform_indices = @transform_0, window_bounds = array<i64: 1, 8, 32>}, {pipeline_mode = #tpu.pipeline_mode<synchronous>, transform_indices = @transform_1, window_bounds = array<i64: 1, 32>}, {pipeline_mode = #tpu.pipeline_mode<synchronous>, transform_indices = @transform_2, window_bounds = array<i64: 1, 32>}, {pipeline_mode = #tpu.pipeline_mode<synchronous>, transform_indices = @transform_3, window_bounds = array<i64: 32, 96>}, {pipeline_mode = #tpu.pipeline_mode<synchronous>, transform_indices = @transform_4, window_bounds = array<i64: 1, 96>}, {transform_indices = @transform_5, window_bounds = array<i64: 1, 8, 96>}]} {
    %c0 = arith.constant 0 : index
    %c0_0 = arith.constant 0 : index
    %c0_1 = arith.constant 0 : index
    %0 = vector.load %arg1[%c0, %c0_0, %c0_1] : memref<1x8x32xbf16, #tpu.memory_space<vmem>>, vector<1x8x32xbf16>
    %1 = vector.shape_cast %0 : vector<1x8x32xbf16> to vector<8x32xbf16>
    %2 = arith.extf %1 : vector<8x32xbf16> to vector<8x32xf32>
    %c0_2 = arith.constant 0 : index
    %c0_3 = arith.constant 0 : index
    %3 = vector.load %arg2[%c0_2, %c0_3] : memref<1x32xf32, #tpu.memory_space<vmem>>, vector<1x32xf32>
    %c0_4 = arith.constant 0 : index
    %c0_5 = arith.constant 0 : index
    %4 = vector.load %arg3[%c0_4, %c0_5] : memref<1x32xf32, #tpu.memory_space<vmem>>, vector<1x32xf32>
    %cst = arith.constant dense<0.000000e+00> : vector<8xf32>
    %5 = vector.multi_reduction <add>, %2, %cst [1] : vector<8x32xf32> to vector<8xf32>
    %6 = vector.shape_cast %5 : vector<8xf32> to vector<8x1xf32>
    %cst_6 = arith.constant 3.200000e+01 : f32
    %7 = vector.broadcast %cst_6 : f32 to vector<8x1xf32>
    %8 = arith.divf %6, %7 : vector<8x1xf32>
    %9 = vector.broadcast %8 : vector<8x1xf32> to vector<8x32xf32>
    %10 = arith.subf %2, %9 : vector<8x32xf32>
    %11 = arith.mulf %10, %10 : vector<8x32xf32>
    %cst_7 = arith.constant dense<0.000000e+00> : vector<8xf32>
    %12 = vector.multi_reduction <add>, %11, %cst_7 [1] : vector<8x32xf32> to vector<8xf32>
    %13 = vector.shape_cast %12 : vector<8xf32> to vector<8x1xf32>
    %cst_8 = arith.constant 3.200000e+01 : f32
    %14 = vector.broadcast %cst_8 : f32 to vector<8x1xf32>
    %15 = arith.divf %13, %14 : vector<8x1xf32>
    %16 = vector.broadcast %8 : vector<8x1xf32> to vector<8x32xf32>
    %17 = arith.subf %2, %16 : vector<8x32xf32>
    %cst_9 = arith.constant 9.99999974E-6 : f32
    %18 = vector.broadcast %cst_9 : f32 to vector<8x1xf32>
    %19 = arith.addf %15, %18 : vector<8x1xf32>
    %20 = math.rsqrt %19 : vector<8x1xf32>
    %21 = vector.broadcast %20 : vector<8x1xf32> to vector<8x32xf32>
    %22 = arith.mulf %17, %21 : vector<8x32xf32>
    %23 = vector.broadcast %3 : vector<1x32xf32> to vector<8x32xf32>
    %24 = arith.mulf %22, %23 : vector<8x32xf32>
    %25 = vector.broadcast %4 : vector<1x32xf32> to vector<8x32xf32>
    %26 = arith.addf %24, %25 : vector<8x32xf32>
    %27 = arith.truncf %26 : vector<8x32xf32> to vector<8x32xbf16>
    %c0_10 = arith.constant 0 : index
    %c0_11 = arith.constant 0 : index
    %28 = vector.load %arg4[%c0_10, %c0_11] : memref<32x96xbf16, #tpu.memory_space<vmem>>, vector<32x96xbf16>
    %cst_12 = arith.constant dense<0.000000e+00> : vector<8x96xf32>
    %29 = tpu.matmul %27, %28, %cst_12 {dimension_numbers = #tpu.dot_dimension_numbers<[1], [0], [0], [1], [0, 0, 1, 1], [], []>} : vector<8x32xbf16>, vector<32x96xbf16>, vector<8x96xf32> -> vector<8x96xf32>
    %c0_13 = arith.constant 0 : index
    %c0_14 = arith.constant 0 : index
    %30 = vector.load %arg5[%c0_13, %c0_14] : memref<1x96xf32, #tpu.memory_space<vmem>>, vector<1x96xf32>
    %31 = vector.broadcast %30 : vector<1x96xf32> to vector<8x96xf32>
    %32 = arith.addf %29, %31 : vector<8x96xf32>
    %33 = arith.truncf %32 : vector<8x96xf32> to vector<8x96xbf16>
    %c0_15 = arith.constant 0 : index
    %c0_16 = arith.constant 0 : index
    %c0_17 = arith.constant 0 : index
    %34 = vector.load %arg6[%c0_15, %c0_16, %c0_17] : memref<1x8x96xbf16, #tpu.memory_space<vmem>>, vector<1x8x96xbf16>
    %35 = vector.shape_cast %34 : vector<1x8x96xbf16> to vector<8x96xbf16>
    %36 = vector.shape_cast %33 : vector<8x96xbf16> to vector<1x8x96xbf16>
    tpu.vector_store %arg6[%c0_15, %c0_16, %c0_17], %36 {strides = array<i32>} : memref<1x8x96xbf16, #tpu.memory_space<vmem>>, vector<1x8x96xbf16>,
    return
  }
  func.func @transform_0(%arg0: i32) -> (i32, i32, i32) {
    %c0_i32 = arith.constant 0 : i32
    %c0_i32_0 = arith.constant 0 : i32
    %c0_i32_1 = arith.constant 0 : i32
    return %arg0, %c0_i32, %c0_i32_0 : i32, i32, i32
  }
  func.func @transform_1(%arg0: i32) -> (i32, i32) {
    %c0_i32 = arith.constant 0 : i32
    %c0_i32_0 = arith.constant 0 : i32
    %c0_i32_1 = arith.constant 0 : i32
    return %c0_i32, %c0_i32_0 : i32, i32
  }
  func.func @transform_2(%arg0: i32) -> (i32, i32) {
    %c0_i32 = arith.constant 0 : i32
    %c0_i32_0 = arith.constant 0 : i32
    %c0_i32_1 = arith.constant 0 : i32
    return %c0_i32, %c0_i32_0 : i32, i32
  }
  func.func @transform_3(%arg0: i32) -> (i32, i32) {
    %c0_i32 = arith.constant 0 : i32
    %c0_i32_0 = arith.constant 0 : i32
    %c0_i32_1 = arith.constant 0 : i32
    return %c0_i32, %c0_i32_0 : i32, i32
  }
  func.func @transform_4(%arg0: i32) -> (i32, i32) {
    %c0_i32 = arith.constant 0 : i32
    %c0_i32_0 = arith.constant 0 : i32
    %c0_i32_1 = arith.constant 0 : i32
    return %c0_i32, %c0_i32_0 : i32, i32
  }
  func.func @transform_5(%arg0: i32) -> (i32, i32, i32) {
    %c0_i32 = arith.constant 0 : i32
    %c0_i32_0 = arith.constant 0 : i32
    %c0_i32_1 = arith.constant 0 : i32
    return %arg0, %c0_i32, %c0_i32_0 : i32, i32, i32
  }
}

module attributes {stable_mosaic.version = 11 : i64} {
  func.func @attn_kernel(%arg0: i32, %arg1: i32, %arg2: memref<1x4x8x8xbf16, #tpu.memory_space<vmem>>, %arg3: memref<1x4x8x8xbf16, #tpu.memory_space<vmem>>, %arg4: memref<1x4x8x8xbf16, #tpu.memory_space<vmem>>, %arg5: memref<1x4x8x8xbf16, #tpu.memory_space<vmem>>) attributes {dimension_semantics = [#tpu.dimension_semantics<parallel>, #tpu.dimension_semantics<parallel>], iteration_bounds = array<i64: 2, 1>, scalar_prefetch = 0 : i64, scratch_operands = 0 : i64, tpu.core_type = #tpu.core_type<tc>, window_params = [{transform_indices = @transform_0, window_bounds = array<i64: 1, 4, 8, 8>}, {transform_indices = @transform_1, window_bounds = array<i64: 1, 4, 8, 8>}, {transform_indices = @transform_2, window_bounds = array<i64: 1, 4, 8, 8>}, {transform_indices = @transform_3, window_bounds = array<i64: 1, 4, 8, 8>}]} {
    %c0 = arith.constant 0 : index
    %c0_0 = arith.constant 0 : index
    %c0_1 = arith.constant 0 : index
    %c0_2 = arith.constant 0 : index
    %0 = vector.load %arg2[%c0, %c0_0, %c0_1, %c0_2] : memref<1x4x8x8xbf16, #tpu.memory_space<vmem>>, vector<1x4x8x8xbf16>
    %1 = vector.shape_cast %0 : vector<1x4x8x8xbf16> to vector<4x8x8xbf16>
    %c0_3 = arith.constant 0 : index
    %c0_4 = arith.constant 0 : index
    %c0_5 = arith.constant 0 : index
    %c0_6 = arith.constant 0 : index
    %2 = vector.load %arg3[%c0_3, %c0_4, %c0_5, %c0_6] : memref<1x4x8x8xbf16, #tpu.memory_space<vmem>>, vector<1x4x8x8xbf16>
    %3 = vector.shape_cast %2 : vector<1x4x8x8xbf16> to vector<4x8x8xbf16>
    %c0_7 = arith.constant 0 : index
    %c0_8 = arith.constant 0 : index
    %c0_9 = arith.constant 0 : index
    %c0_10 = arith.constant 0 : index
    %4 = vector.load %arg4[%c0_7, %c0_8, %c0_9, %c0_10] : memref<1x4x8x8xbf16, #tpu.memory_space<vmem>>, vector<1x4x8x8xbf16>
    %5 = vector.shape_cast %4 : vector<1x4x8x8xbf16> to vector<4x8x8xbf16>
    "tpu.trace_start"() <{level = 10 : i32, message = "hqd,hkd->hqk"}> : () -> ()
    %cst = arith.constant dense<0.000000e+00> : vector<4x8x8xf32>
    %6 = tpu.matmul %1, %3, %cst {dimension_numbers = #tpu.dot_dimension_numbers<[2], [2], [1], [1], [0, 0, 0, 1, 1, 1], [0], [0]>} : vector<4x8x8xbf16>, vector<4x8x8xbf16>, vector<4x8x8xf32> -> vector<4x8x8xf32>
    "tpu.trace_stop"() : () -> ()
    %cst_11 = arith.constant 0.353553385 : f32
    %7 = vector.broadcast %cst_11 : f32 to vector<4x8x8xf32>
    %8 = arith.mulf %6, %7 : vector<4x8x8xf32>
    %9 = tpu.iota {dimensions = array<i32: 0>} : vector<8x8xi32>
    %c8_i32 = arith.constant 8 : i32
    %10 = arith.muli %arg1, %c8_i32 : i32
    %11 = vector.broadcast %10 : i32 to vector<8x8xi32>
    %12 = arith.addi %9, %11 : vector<8x8xi32>
    %13 = tpu.iota {dimensions = array<i32: 1>} : vector<8x8xi32>
    %14 = arith.cmpi sge, %12, %13 : vector<8x8xi32>
    %15 = vector.shape_cast %14 : vector<8x8xi1> to vector<1x8x8xi1>
    %cst_12 = arith.constant -1.000000e+30 : f32
    %16 = vector.shape_cast %15 : vector<1x8x8xi1> to vector<1x8x8xi1>
    %17 = vector.broadcast %16 : vector<1x8x8xi1> to vector<4x8x8xi1>
    %18 = vector.broadcast %cst_12 : f32 to vector<4x8x8xf32>
    %19 = arith.select %17, %8, %18 : vector<4x8x8xi1>, vector<4x8x8xf32>
    %cst_13 = arith.constant dense<0xFF800000> : vector<4x8xf32>
    %20 = vector.multi_reduction <maximumf>, %19, %cst_13 [2] : vector<4x8x8xf32> to vector<4x8xf32>
    %21 = vector.shape_cast %20 : vector<4x8xf32> to vector<4x8x1xf32>
    %22 = vector.broadcast %21 : vector<4x8x1xf32> to vector<4x8x8xf32>
    %23 = arith.subf %19, %22 : vector<4x8x8xf32>
    %24 = math.exp %23 : vector<4x8x8xf32>
    %cst_14 = arith.constant dense<0.000000e+00> : vector<4x8xf32>
    %25 = vector.multi_reduction <add>, %24, %cst_14 [2] : vector<4x8x8xf32> to vector<4x8xf32>
    %26 = vector.shape_cast %25 : vector<4x8xf32> to vector<4x8x1xf32>
    %27 = tpu.reciprocal %26 {approx = true} : vector<4x8x1xf32> -> vector<4x8x1xf32>
    %28 = vector.broadcast %27 : vector<4x8x1xf32> to vector<4x8x8xf32>
    %29 = arith.mulf %24, %28 : vector<4x8x8xf32>
    %30 = arith.truncf %29 : vector<4x8x8xf32> to vector<4x8x8xbf16>
    "tpu.trace_start"() <{level = 10 : i32, message = "hqk,hkd->hqd"}> : () -> ()
    %cst_15 = arith.constant dense<0.000000e+00> : vector<4x8x8xf32>
    %31 = tpu.matmul %30, %5, %cst_15 {dimension_numbers = #tpu.dot_dimension_numbers<[2], [1], [1], [2], [0, 0, 0, 1, 1, 2], [0], [0]>} : vector<4x8x8xbf16>, vector<4x8x8xbf16>, vector<4x8x8xf32> -> vector<4x8x8xf32>
    "tpu.trace_stop"() : () -> ()
    %32 = arith.truncf %31 : vector<4x8x8xf32> to vector<4x8x8xbf16>
    %c0_16 = arith.constant 0 : index
    %c0_17 = arith.constant 0 : index
    %c0_18 = arith.constant 0 : index
    %c0_19 = arith.constant 0 : index
    %33 = vector.load %arg5[%c0_16, %c0_17, %c0_18, %c0_19] : memref<1x4x8x8xbf16, #tpu.memory_space<vmem>>, vector<1x4x8x8xbf16>
    %34 = vector.shape_cast %33 : vector<1x4x8x8xbf16> to vector<4x8x8xbf16>
    %35 = vector.shape_cast %32 : vector<4x8x8xbf16> to vector<1x4x8x8xbf16>
    tpu.vector_store %arg5[%c0_16, %c0_17, %c0_18, %c0_19], %35 {strides = array<i32>} : memref<1x4x8x8xbf16, #tpu.memory_space<vmem>>, vector<1x4x8x8xbf16>,
    return
  }
  func.func @transform_0(%arg0: i32, %arg1: i32) -> (i32, i32, i32, i32) {
    %c0_i32 = arith.constant 0 : i32
    %c0_i32_0 = arith.constant 0 : i32
    %c0_i32_1 = arith.constant 0 : i32
    return %arg0, %c0_i32, %arg1, %c0_i32_0 : i32, i32, i32, i32
  }
  func.func @transform_1(%arg0: i32, %arg1: i32) -> (i32, i32, i32, i32) {
    %c0_i32 = arith.constant 0 : i32
    %c0_i32_0 = arith.constant 0 : i32
    %c0_i32_1 = arith.constant 0 : i32
    %c0_i32_2 = arith.constant 0 : i32
    return %arg0, %c0_i32, %c0_i32_0, %c0_i32_1 : i32, i32, i32, i32
  }
  func.func @transform_2(%arg0: i32, %arg1: i32) -> (i32, i32, i32, i32) {
    %c0_i32 = arith.constant 0 : i32
    %c0_i32_0 = arith.constant 0 : i32
    %c0_i32_1 = arith.constant 0 : i32
    %c0_i32_2 = arith.constant 0 : i32
    return %arg0, %c0_i32, %c0_i32_0, %c0_i32_1 : i32, i32, i32, i32
  }
  func.func @transform_3(%arg0: i32, %arg1: i32) -> (i32, i32, i32, i32) {
    %c0_i32 = arith.constant 0 : i32
    %c0_i32_0 = arith.constant 0 : i32
    %c0_i32_1 = arith.constant 0 : i32
    return %arg0, %c0_i32, %arg1, %c0_i32_0 : i32, i32, i32, i32
  }
}

module attributes {stable_mosaic.version = 11 : i64} {
  func.func @proj_mlp_kernel(%arg0: i32, %arg1: memref<1x8x32xbf16, #tpu.memory_space<vmem>>, %arg2: memref<1x8x32xbf16, #tpu.memory_space<vmem>>, %arg3: memref<32x32xbf16, #tpu.memory_space<vmem>>, %arg4: memref<1x32xf32, #tpu.memory_space<vmem>>, %arg5: memref<1x32xf32, #tpu.memory_space<vmem>>, %arg6: memref<1x32xf32, #tpu.memory_space<vmem>>, %arg7: memref<32x128xbf16, #tpu.memory_space<vmem>>, %arg8: memref<1x128xf32, #tpu.memory_space<vmem>>, %arg9: memref<128x32xbf16, #tpu.memory_space<vmem>>, %arg10: memref<1x32xf32, #tpu.memory_space<vmem>>, %arg11: memref<1x8x32xbf16, #tpu.memory_space<vmem>>, %arg12: memref<8x32xf32, #tpu.memory_space<vmem>>) attributes {dimension_semantics = [#tpu.dimension_semantics<parallel>], iteration_bounds = array<i64: 2>, scalar_prefetch = 0 : i64, scratch_operands = 1 : i64, tpu.core_type = #tpu.core_type<tc>, window_params = [{transform_indices = @transform_0, window_bounds = array<i64: 1, 8, 32>}, {transform_indices = @transform_1, window_bounds = array<i64: 1, 8, 32>}, {pipeline_mode = #tpu.pipeline_mode<synchronous>, transform_indices = @transform_2, window_bounds = array<i64: 32, 32>}, {pipeline_mode = #tpu.pipeline_mode<synchronous>, transform_indices = @transform_3, window_bounds = array<i64: 1, 32>}, {pipeline_mode = #tpu.pipeline_mode<synchronous>, transform_indices = @transform_4, window_bounds = array<i64: 1, 32>}, {pipeline_mode = #tpu.pipeline_mode<synchronous>, transform_indices = @transform_5, window_bounds = array<i64: 1, 32>}, {pipeline_mode = #tpu.pipeline_mode<synchronous>, transform_indices = @transform_6, window_bounds = array<i64: 32, 128>}, {pipeline_mode = #tpu.pipeline_mode<synchronous>, transform_indices = @transform_7, window_bounds = array<i64: 1, 128>}, {pipeline_mode = #tpu.pipeline_mode<synchronous>, transform_indices = @transform_8, window_bounds = array<i64: 128, 32>}, {pipeline_mode = #tpu.pipeline_mode<synchronous>, transform_indices = @transform_9, window_bounds = array<i64: 1, 32>}, {transform_indices = @transform_10, window_bounds = array<i64: 1, 8, 32>}]} {
    %c0 = arith.constant 0 : index
    %c0_0 = arith.constant 0 : index
    %c0_1 = arith.constant 0 : index
    %0 = vector.load %arg1[%c0, %c0_0, %c0_1] : memref<1x8x32xbf16, #tpu.memory_space<vmem>>, vector<1x8x32xbf16>
    %1 = vector.shape_cast %0 : vector<1x8x32xbf16> to vector<8x32xbf16>
    %2 = arith.extf %1 : vector<8x32xbf16> to vector<8x32xf32>
    %c0_2 = arith.constant 0 : index
    %c0_3 = arith.constant 0 : index
    %c0_4 = arith.constant 0 : index
    %3 = vector.load %arg2[%c0_2, %c0_3, %c0_4] : memref<1x8x32xbf16, #tpu.memory_space<vmem>>, vector<1x8x32xbf16>
    %4 = vector.shape_cast %3 : vector<1x8x32xbf16> to vector<8x32xbf16>
    %c0_5 = arith.constant 0 : index
    %c0_6 = arith.constant 0 : index
    %5 = vector.load %arg3[%c0_5, %c0_6] : memref<32x32xbf16, #tpu.memory_space<vmem>>, vector<32x32xbf16>
    %cst = arith.constant dense<0.000000e+00> : vector<8x32xf32>
    %6 = tpu.matmul %4, %5, %cst {dimension_numbers = #tpu.dot_dimension_numbers<[1], [0], [0], [1], [0, 0, 1, 1], [], []>} : vector<8x32xbf16>, vector<32x32xbf16>, vector<8x32xf32> -> vector<8x32xf32>
    %7 = arith.addf %2, %6 : vector<8x32xf32>
    %c0_7 = arith.constant 0 : index
    %c0_8 = arith.constant 0 : index
    %8 = vector.load %arg4[%c0_7, %c0_8] : memref<1x32xf32, #tpu.memory_space<vmem>>, vector<1x32xf32>
    %9 = vector.broadcast %8 : vector<1x32xf32> to vector<8x32xf32>
    %10 = arith.addf %7, %9 : vector<8x32xf32>
    %c0_9 = arith.constant 0 : index
    %c0_10 = arith.constant 0 : index
    %11 = vector.load %arg5[%c0_9, %c0_10] : memref<1x32xf32, #tpu.memory_space<vmem>>, vector<1x32xf32>
    %c0_11 = arith.constant 0 : index
    %c0_12 = arith.constant 0 : index
    %12 = vector.load %arg6[%c0_11, %c0_12] : memref<1x32xf32, #tpu.memory_space<vmem>>, vector<1x32xf32>
    %cst_13 = arith.constant dense<0.000000e+00> : vector<8xf32>
    %13 = vector.multi_reduction <add>, %10, %cst_13 [1] : vector<8x32xf32> to vector<8xf32>
    %14 = vector.shape_cast %13 : vector<8xf32> to vector<8x1xf32>
    %cst_14 = arith.constant 3.200000e+01 : f32
    %15 = vector.broadcast %cst_14 : f32 to vector<8x1xf32>
    %16 = arith.divf %14, %15 : vector<8x1xf32>
    %17 = vector.broadcast %16 : vector<8x1xf32> to vector<8x32xf32>
    %18 = arith.subf %10, %17 : vector<8x32xf32>
    %19 = arith.mulf %18, %18 : vector<8x32xf32>
    %cst_15 = arith.constant dense<0.000000e+00> : vector<8xf32>
    %20 = vector.multi_reduction <add>, %19, %cst_15 [1] : vector<8x32xf32> to vector<8xf32>
    %21 = vector.shape_cast %20 : vector<8xf32> to vector<8x1xf32>
    %cst_16 = arith.constant 3.200000e+01 : f32
    %22 = vector.broadcast %cst_16 : f32 to vector<8x1xf32>
    %23 = arith.divf %21, %22 : vector<8x1xf32>
    %24 = vector.broadcast %16 : vector<8x1xf32> to vector<8x32xf32>
    %25 = arith.subf %10, %24 : vector<8x32xf32>
    %cst_17 = arith.constant 9.99999974E-6 : f32
    %26 = vector.broadcast %cst_17 : f32 to vector<8x1xf32>
    %27 = arith.addf %23, %26 : vector<8x1xf32>
    %28 = math.rsqrt %27 : vector<8x1xf32>
    %29 = vector.broadcast %28 : vector<8x1xf32> to vector<8x32xf32>
    %30 = arith.mulf %25, %29 : vector<8x32xf32>
    %31 = vector.broadcast %11 : vector<1x32xf32> to vector<8x32xf32>
    %32 = arith.mulf %30, %31 : vector<8x32xf32>
    %33 = vector.broadcast %12 : vector<1x32xf32> to vector<8x32xf32>
    %34 = arith.addf %32, %33 : vector<8x32xf32>
    %35 = arith.truncf %34 : vector<8x32xf32> to vector<8x32xbf16>
    %c0_18 = arith.constant 0 : index
    %c0_19 = arith.constant 0 : index
    %36 = vector.load %arg10[%c0_18, %c0_19] : memref<1x32xf32, #tpu.memory_space<vmem>>, vector<1x32xf32>
    %37 = vector.broadcast %36 : vector<1x32xf32> to vector<8x32xf32>
    %38 = arith.addf %10, %37 : vector<8x32xf32>
    %c0_20 = arith.constant 0 : index
    %c0_21 = arith.constant 0 : index
    %39 = vector.load %arg12[%c0_20, %c0_21] : memref<8x32xf32, #tpu.memory_space<vmem>>, vector<8x32xf32>
    tpu.vector_store %arg12[%c0_20, %c0_21], %38 {strides = array<i32>} : memref<8x32xf32, #tpu.memory_space<vmem>>, vector<8x32xf32>,
    %c0_i32 = arith.constant 0 : i32
    %c128_i32 = arith.constant 128 : i32
    %40 = arith.muli %c0_i32, %c128_i32 : i32
    %41 = tpu.assume_multiple %40, 128 : i32
    %c0_22 = arith.constant 0 : index
    %42 = arith.index_cast %41 : i32 to index
    %43 = vector.load %arg7[%c0_22, %42] : memref<32x128xbf16, #tpu.memory_space<vmem>>, vector<32x128xbf16>
    %cst_23 = arith.constant dense<0.000000e+00> : vector<8x128xf32>
    %44 = tpu.matmul %35, %43, %cst_23 {dimension_numbers = #tpu.dot_dimension_numbers<[1], [0], [0], [1], [0, 0, 1, 1], [], []>} : vector<8x32xbf16>, vector<32x128xbf16>, vector<8x128xf32> -> vector<8x128xf32>
    %c0_24 = arith.constant 0 : index
    %45 = arith.index_cast %41 : i32 to index
    %46 = vector.load %arg8[%c0_24, %45] : memref<1x128xf32, #tpu.memory_space<vmem>>, vector<1x128xf32>
    %47 = vector.broadcast %46 : vector<1x128xf32> to vector<8x128xf32>
    %48 = arith.addf %44, %47 : vector<8x128xf32>
    %cst_25 = arith.constant 5.000000e-01 : f32
    %49 = vector.broadcast %cst_25 : f32 to vector<8x128xf32>
    %50 = arith.mulf %49, %48 : vector<8x128xf32>
    %cst_26 = arith.constant 0.707106769 : f32
    %51 = vector.broadcast %cst_26 : f32 to vector<8x128xf32>
    %52 = arith.mulf %48, %51 : vector<8x128xf32>
    %cst_27 = arith.constant 0.000000e+00 : f32
    %53 = vector.broadcast %cst_27 : f32 to vector<8x128xf32>
    %54 = arith.cmpf oge, %52, %53 : vector<8x128xf32>
    %cst_28 = arith.constant 1.000000e+00 : f32
    %cst_29 = arith.constant -1.000000e+00 : f32
    %55 = vector.broadcast %cst_28 : f32 to vector<8x128xf32>
    %56 = vector.broadcast %cst_29 : f32 to vector<8x128xf32>
    %57 = arith.select %54, %55, %56 : vector<8x128xi1>, vector<8x128xf32>
    %58 = math.absf %52 : vector<8x128xf32>
    %cst_30 = arith.constant 0.327591091 : f32
    %59 = vector.broadcast %cst_30 : f32 to vector<8x128xf32>
    %60 = arith.mulf %59, %58 : vector<8x128xf32>
    %cst_31 = arith.constant 1.000000e+00 : f32
    %61 = vector.broadcast %cst_31 : f32 to vector<8x128xf32>
    %62 = arith.addf %61, %60 : vector<8x128xf32>
    %cst_32 = arith.constant 1.000000e+00 : f32
    %63 = vector.broadcast %cst_32 : f32 to vector<8x128xf32>
    %64 = arith.divf %63, %62 : vector<8x128xf32>
    %cst_33 = arith.constant 1.06140542 : f32
    %65 = vector.broadcast %cst_33 : f32 to vector<8x128xf32>
    %66 = arith.mulf %65, %64 : vector<8x128xf32>
    %cst_34 = arith.constant -1.45315206 : f32
    %67 = vector.broadcast %cst_34 : f32 to vector<8x128xf32>
    %68 = arith.addf %66, %67 : vector<8x128xf32>
    %69 = arith.mulf %68, %64 : vector<8x128xf32>
    %cst_35 = arith.constant 1.42141378 : f32
    %70 = vector.broadcast %cst_35 : f32 to vector<8x128xf32>
    %71 = arith.addf %69, %70 : vector<8x128xf32>
    %72 = arith.mulf %71, %64 : vector<8x128xf32>
    %cst_36 = arith.constant -0.284496725 : f32
    %73 = vector.broadcast %cst_36 : f32 to vector<8x128xf32>
    %74 = arith.addf %72, %73 : vector<8x128xf32>
    %75 = arith.mulf %74, %64 : vector<8x128xf32>
    %cst_37 = arith.constant 0.254829586 : f32
    %76 = vector.broadcast %cst_37 : f32 to vector<8x128xf32>
    %77 = arith.addf %75, %76 : vector<8x128xf32>
    %78 = arith.mulf %77, %64 : vector<8x128xf32>
    %cst_38 = arith.constant 0.000000e+00 : f32
    %79 = vector.broadcast %cst_38 : f32 to vector<8x128xf32>
    %80 = arith.subf %79, %58 : vector<8x128xf32>
    %81 = arith.mulf %80, %58 : vector<8x128xf32>
    %82 = math.exp %81 : vector<8x128xf32>
    %83 = arith.mulf %78, %82 : vector<8x128xf32>
    %cst_39 = arith.constant 1.000000e+00 : f32
    %84 = vector.broadcast %cst_39 : f32 to vector<8x128xf32>
    %85 = arith.subf %84, %83 : vector<8x128xf32>
    %86 = arith.mulf %57, %85 : vector<8x128xf32>
    %cst_40 = arith.constant 1.000000e+00 : f32
    %87 = vector.broadcast %cst_40 : f32 to vector<8x128xf32>
    %88 = arith.addf %87, %86 : vector<8x128xf32>
    %89 = arith.mulf %50, %88 : vector<8x128xf32>
    %90 = arith.truncf %89 : vector<8x128xf32> to vector<8x128xbf16>
    %c0_41 = arith.constant 0 : index
    %c0_42 = arith.constant 0 : index
    %91 = vector.load %arg12[%c0_41, %c0_42] : memref<8x32xf32, #tpu.memory_space<vmem>>, vector<8x32xf32>
    %92 = arith.index_cast %41 : i32 to index
    %c0_43 = arith.constant 0 : index
    %93 = vector.load %arg9[%92, %c0_43] : memref<128x32xbf16, #tpu.memory_space<vmem>>, vector<128x32xbf16>
    %cst_44 = arith.constant dense<0.000000e+00> : vector<8x32xf32>
    %94 = tpu.matmul %90, %93, %cst_44 {dimension_numbers = #tpu.dot_dimension_numbers<[1], [0], [0], [1], [0, 0, 1, 1], [], []>} : vector<8x128xbf16>, vector<128x32xbf16>, vector<8x32xf32> -> vector<8x32xf32>
    %95 = arith.addf %91, %94 : vector<8x32xf32>
    %c0_45 = arith.constant 0 : index
    %c0_46 = arith.constant 0 : index
    %96 = vector.load %arg12[%c0_45, %c0_46] : memref<8x32xf32, #tpu.memory_space<vmem>>, vector<8x32xf32>
    tpu.vector_store %arg12[%c0_45, %c0_46], %95 {strides = array<i32>} : memref<8x32xf32, #tpu.memory_space<vmem>>, vector<8x32xf32>,
    %c1_i32 = arith.constant 1 : i32
    %c0_47 = arith.constant 0 : index
    %c0_48 = arith.constant 0 : index
    %97 = vector.load %arg12[%c0_47, %c0_48] : memref<8x32xf32, #tpu.memory_space<vmem>>, vector<8x32xf32>
    %98 = arith.truncf %97 : vector<8x32xf32> to vector<8x32xbf16>
    %c0_49 = arith.constant 0 : index
    %c0_50 = arith.constant 0 : index
    %c0_51 = arith.constant 0 : index
    %99 = vector.load %arg11[%c0_49, %c0_50, %c0_51] : memref<1x8x32xbf16, #tpu.memory_space<vmem>>, vector<1x8x32xbf16>
    %100 = vector.shape_cast %99 : vector<1x8x32xbf16> to vector<8x32xbf16>
    %101 = vector.shape_cast %98 : vector<8x32xbf16> to vector<1x8x32xbf16>
    tpu.vector_store %arg11[%c0_49, %c0_50, %c0_51], %101 {strides = array<i32>} : memref<1x8x32xbf16, #tpu.memory_space<vmem>>, vector<1x8x32xbf16>,
    return
  }
  func.func @transform_0(%arg0: i32) -> (i32, i32, i32) {
    %c0_i32 = arith.constant 0 : i32
    %c0_i32_0 = arith.constant 0 : i32
    %c0_i32_1 = arith.constant 0 : i32
    return %arg0, %c0_i32, %c0_i32_0 : i32, i32, i32
  }
  func.func @transform_1(%arg0: i32) -> (i32, i32, i32) {
    %c0_i32 = arith.constant 0 : i32
    %c0_i32_0 = arith.constant 0 : i32
    %c0_i32_1 = arith.constant 0 : i32
    return %arg0, %c0_i32, %c0_i32_0 : i32, i32, i32
  }
  func.func @transform_2(%arg0: i32) -> (i32, i32) {
    %c0_i32 = arith.constant 0 : i32
    %c0_i32_0 = arith.constant 0 : i32
    %c0_i32_1 = arith.constant 0 : i32
    return %c0_i32, %c0_i32_0 : i32, i32
  }
  func.func @transform_3(%arg0: i32) -> (i32, i32) {
    %c0_i32 = arith.constant 0 : i32
    %c0_i32_0 = arith.constant 0 : i32
    %c0_i32_1 = arith.constant 0 : i32
    return %c0_i32, %c0_i32_0 : i32, i32
  }
  func.func @transform_4(%arg0: i32) -> (i32, i32) {
    %c0_i32 = arith.constant 0 : i32
    %c0_i32_0 = arith.constant 0 : i32
    %c0_i32_1 = arith.constant 0 : i32
    return %c0_i32, %c0_i32_0 : i32, i32
  }
  func.func @transform_5(%arg0: i32) -> (i32, i32) {
    %c0_i32 = arith.constant 0 : i32
    %c0_i32_0 = arith.constant 0 : i32
    %c0_i32_1 = arith.constant 0 : i32
    return %c0_i32, %c0_i32_0 : i32, i32
  }
  func.func @transform_6(%arg0: i32) -> (i32, i32) {
    %c0_i32 = arith.constant 0 : i32
    %c0_i32_0 = arith.constant 0 : i32
    %c0_i32_1 = arith.constant 0 : i32
    return %c0_i32, %c0_i32_0 : i32, i32
  }
  func.func @transform_7(%arg0: i32) -> (i32, i32) {
    %c0_i32 = arith.constant 0 : i32
    %c0_i32_0 = arith.constant 0 : i32
    %c0_i32_1 = arith.constant 0 : i32
    return %c0_i32, %c0_i32_0 : i32, i32
  }
  func.func @transform_8(%arg0: i32) -> (i32, i32) {
    %c0_i32 = arith.constant 0 : i32
    %c0_i32_0 = arith.constant 0 : i32
    %c0_i32_1 = arith.constant 0 : i32
    return %c0_i32, %c0_i32_0 : i32, i32
  }
  func.func @transform_9(%arg0: i32) -> (i32, i32) {
    %c0_i32 = arith.constant 0 : i32
    %c0_i32_0 = arith.constant 0 : i32
    %c0_i32_1 = arith.constant 0 : i32
    return %c0_i32, %c0_i32_0 : i32, i32
  }
  func.func @transform_10(%arg0: i32) -> (i32, i32, i32) {
    %c0_i32 = arith.constant 0 : i32
    %c0_i32_0 = arith.constant 0 : i32
    %c0_i32_1 = arith.constant 0 : i32
    return %arg0, %c0_i32, %c0_i32_0 : i32, i32, i32
  }
}

module attributes {stable_mosaic.version = 11 : i64} {
  func.func @final_ln_kernel(%arg0: memref<2x32xbf16, #tpu.memory_space<vmem>>, %arg1: memref<1x32xf32, #tpu.memory_space<vmem>>, %arg2: memref<1x32xf32, #tpu.memory_space<vmem>>, %arg3: memref<2x32xbf16, #tpu.memory_space<vmem>>) attributes {dimension_semantics = [], scalar_prefetch = 0 : i64, scratch_operands = 0 : i64, tpu.core_type = #tpu.core_type<tc>} {
    %c0 = arith.constant 0 : index
    %c0_0 = arith.constant 0 : index
    %0 = vector.load %arg0[%c0, %c0_0] : memref<2x32xbf16, #tpu.memory_space<vmem>>, vector<2x32xbf16>
    %1 = arith.extf %0 : vector<2x32xbf16> to vector<2x32xf32>
    %c0_1 = arith.constant 0 : index
    %c0_2 = arith.constant 0 : index
    %2 = vector.load %arg1[%c0_1, %c0_2] : memref<1x32xf32, #tpu.memory_space<vmem>>, vector<1x32xf32>
    %c0_3 = arith.constant 0 : index
    %c0_4 = arith.constant 0 : index
    %3 = vector.load %arg2[%c0_3, %c0_4] : memref<1x32xf32, #tpu.memory_space<vmem>>, vector<1x32xf32>
    %cst = arith.constant dense<0.000000e+00> : vector<2xf32>
    %4 = vector.multi_reduction <add>, %1, %cst [1] : vector<2x32xf32> to vector<2xf32>
    %5 = vector.shape_cast %4 : vector<2xf32> to vector<2x1xf32>
    %cst_5 = arith.constant 3.200000e+01 : f32
    %6 = vector.broadcast %cst_5 : f32 to vector<2x1xf32>
    %7 = arith.divf %5, %6 : vector<2x1xf32>
    %8 = vector.broadcast %7 : vector<2x1xf32> to vector<2x32xf32>
    %9 = arith.subf %1, %8 : vector<2x32xf32>
    %10 = arith.mulf %9, %9 : vector<2x32xf32>
    %cst_6 = arith.constant dense<0.000000e+00> : vector<2xf32>
    %11 = vector.multi_reduction <add>, %10, %cst_6 [1] : vector<2x32xf32> to vector<2xf32>
    %12 = vector.shape_cast %11 : vector<2xf32> to vector<2x1xf32>
    %cst_7 = arith.constant 3.200000e+01 : f32
    %13 = vector.broadcast %cst_7 : f32 to vector<2x1xf32>
    %14 = arith.divf %12, %13 : vector<2x1xf32>
    %15 = vector.broadcast %7 : vector<2x1xf32> to vector<2x32xf32>
    %16 = arith.subf %1, %15 : vector<2x32xf32>
    %cst_8 = arith.constant 9.99999974E-6 : f32
    %17 = vector.broadcast %cst_8 : f32 to vector<2x1xf32>
    %18 = arith.addf %14, %17 : vector<2x1xf32>
    %19 = math.rsqrt %18 : vector<2x1xf32>
    %20 = vector.broadcast %19 : vector<2x1xf32> to vector<2x32xf32>
    %21 = arith.mulf %16, %20 : vector<2x32xf32>
    %22 = vector.broadcast %2 : vector<1x32xf32> to vector<2x32xf32>
    %23 = arith.mulf %21, %22 : vector<2x32xf32>
    %24 = vector.broadcast %3 : vector<1x32xf32> to vector<2x32xf32>
    %25 = arith.addf %23, %24 : vector<2x32xf32>
    %26 = arith.truncf %25 : vector<2x32xf32> to vector<2x32xbf16>
    %c0_9 = arith.constant 0 : index
    %c0_10 = arith.constant 0 : index
    %27 = vector.load %arg3[%c0_9, %c0_10] : memref<2x32xbf16, #tpu.memory_space<vmem>>, vector<2x32xbf16>
    tpu.vector_store %arg3[%c0_9, %c0_10], %26 {strides = array<i32>} : memref<2x32xbf16, #tpu.memory_space<vmem>>, vector<2x32xbf16>,
    return
  }
}

module attributes {stable_mosaic.version = 11 : i64} {
  func.func @lm_head_kernel(%arg0: i32, %arg1: memref<2x32xbf16, #tpu.memory_space<vmem>>, %arg2: memref<32x64xbf16, #tpu.memory_space<vmem>>, %arg3: memref<2x64xf32, #tpu.memory_space<vmem>>) attributes {dimension_semantics = [#tpu.dimension_semantics<parallel>], iteration_bounds = array<i64: 1>, scalar_prefetch = 0 : i64, scratch_operands = 0 : i64, tpu.core_type = #tpu.core_type<tc>, window_params = [{pipeline_mode = #tpu.pipeline_mode<synchronous>, transform_indices = @transform_0, window_bounds = array<i64: 2, 32>}, {transform_indices = @transform_1, window_bounds = array<i64: 32, 64>}, {transform_indices = @transform_2, window_bounds = array<i64: 2, 64>}]} {
    %c0 = arith.constant 0 : index
    %c0_0 = arith.constant 0 : index
    %0 = vector.load %arg1[%c0, %c0_0] : memref<2x32xbf16, #tpu.memory_space<vmem>>, vector<2x32xbf16>
    %c0_1 = arith.constant 0 : index
    %c0_2 = arith.constant 0 : index
    %1 = vector.load %arg2[%c0_1, %c0_2] : memref<32x64xbf16, #tpu.memory_space<vmem>>, vector<32x64xbf16>
    %cst = arith.constant dense<0.000000e+00> : vector<2x64xf32>
    %2 = tpu.matmul %0, %1, %cst {dimension_numbers = #tpu.dot_dimension_numbers<[1], [0], [0], [1], [0, 0, 1, 1], [], []>} : vector<2x32xbf16>, vector<32x64xbf16>, vector<2x64xf32> -> vector<2x64xf32>
    %c0_3 = arith.constant 0 : index
    %c0_4 = arith.constant 0 : index
    %3 = vector.load %arg3[%c0_3, %c0_4] : memref<2x64xf32, #tpu.memory_space<vmem>>, vector<2x64xf32>
    tpu.vector_store %arg3[%c0_3, %c0_4], %2 {strides = array<i32>} : memref<2x64xf32, #tpu.memory_space<vmem>>, vector<2x64xf32>,
    return
  }
  func.func @transform_0(%arg0: i32) -> (i32, i32) {
    %c0_i32 = arith.constant 0 : i32
    %c0_i32_0 = arith.constant 0 : i32
    %c0_i32_1 = arith.constant 0 : i32
    return %c0_i32, %c0_i32_0 : i32, i32
  }
  func.func @transform_1(%arg0: i32) -> (i32, i32) {
    %c0_i32 = arith.constant 0 : i32
    %c0_i32_0 = arith.constant 0 : i32
    return %c0_i32, %arg0 : i32, i32
  }
  func.func @transform_2(%arg0: i32) -> (i32, i32) {
    %c0_i32 = arith.constant 0 : i32
    %c0_i32_0 = arith.constant 0 : i32
    return %c0_i32, %arg0 : i32, i32
  }
}

</mosaic_0001>

<bundles_post_ra>
// kernel: gpt_forward.14
= control target key start
LH: loop header
LB: loop body
LE: loop exit
PB: predicated region body
PF: predicated region fallthrough
CT: control target
= control target key end

     0   :  { %vm18_vm0 = vcmask 254976   ;;  %v70_v3 = vmov 32.0   ;;  %vm57_vm5 = vcmask 253952   ;;  %s105_s0 = inlined_call_operand.vmem [shape: bf16[2,32], index: 0, kind: input, shape index: {}]   ;;  %s106_s1 = inlined_call_operand.vmem [shape: f32[1,32], index: 1, kind: input, shape index: {}]   ;;  %s107_s2 = inlined_call_operand.vmem [shape: f32[1,32], index: 2, kind: input, shape index: {}]   ;;  %s108_s3 = inlined_call_operand.vmem [shape: bf16[2,32], index: 3, kind: output, shape index: {}]  }
   0x1   :  { %v14_v0 = vld [vmem:[%s105_s0] sm:$0x1]  ;;  %66 = vrcp.f32 %v70_v3 }
   0x2   :  { %v15_v1 = vunpack.c.l.bf16 %v14_v0  ;;  %v64_v24 = vld [vmem:[%s106_s1] ss:$0 sm:$0xff] }
   0x3   :  { %v65_v26 = vld [vmem:[%s107_s2] ss:$0 sm:$0xff] }
   0x4   :  { %v19_v2 = vsel %vm18_vm0, %v15_v1, 0.0 }
   0x5   :  { %20 = vadd.xlane.f32.xlu0 %v19_v2 }
   0x7   :  { %v67_v4 = vpop.eup %66 }
   0x8   :  { %v23_v5 = vmul.f32 32.0, %v67_v4  ;;  %vm27_vm1 = vweird.f32 %v67_v4 }
   0xa   :  { %v24_v6 = vsub.f32 1.0, %v23_v5 }
   0xc   :  { %v25_v7 = vmul.f32 %v67_v4, %v24_v6 }
   0xe   :  { %v26_v8 = vadd.f32 %v67_v4, %v25_v7 }
  0x10   :  { %v28_v9 = vsel %vm27_vm1, %v67_v4, %v26_v8 }
  0x78   :  { %v21_v10 = vpop.xlane.xlu0 %20 }
  0x79   :  { %v29_v11 = vmul.f32 %v28_v9, %v21_v10 }
  0x7b   :  { %v30_v12 = vsub.f32 %v15_v1, %v29_v11 }
  0x7d   :  { %v31_v13 = vmul.f32 %v30_v12, %v30_v12 }
  0x7f   :  { %v32_v14 = vsel %vm18_vm0, %v31_v13, 0.0 }
  0x80   :  { %33 = vadd.xlane.f32.xlu0 %v32_v14 }
  0xf3   :  { %v34_v15 = vpop.xlane.xlu0 %33 }
  0xf4   :  { %v35_v16 = vmul.f32 %v34_v15, %v28_v9 }
  0xf6   :  { %v36_v17 = vadd.f32 1e-05, %v35_v16 }
  0xf8   :  { %68 = vrsqrt.f32 %v36_v17  ;;  %vm43_vm3 = vweird.f32 %v36_v17 }
  0xfe   :  { %v69_v18 = vpop.eup %68 }
  0xff   :  { %v38_v19 = vmul.f32 %v69_v18, %v36_v17  ;;  %vm44_vm2 = vweird.f32 %v69_v18 }
 0x100   :  { %vm45_vm4 = vmor %vm43_vm3, %vm44_vm2 }
 0x101   :  { %v39_v20 = vmul.f32 %v69_v18, %v38_v19 }
 0x103   :  { %v40_v21 = vmul.f32 0.5, %v39_v20 }
 0x105   :  { %v41_v22 = vsub.f32 1.5, %v40_v21 }
 0x107   :  { %v42_v23 = vmul.f32 %v69_v18, %v41_v22 }
 0x109   :  { %v46_v25 = vsel %vm45_vm4, %v69_v18, %v42_v23 }
 0x10a   :  { %v47_v27 = vmul.f32 %v46_v25, %v30_v12 }
 0x10c   :  { %v51_v28 = vmul.f32 %v64_v24, %v47_v27 }
 0x10e   :  { %v55_v29 = vadd.f32 %v65_v26, %v51_v28 }
 0x110   :  { %v56_v30 = vpack.c.bf16 %v55_v29, %v55_v29 }
 0x112   :  { %58 = vst.msk [vmem:[%s108_s3] sm:$0x1] %vm57_vm5, %v56_v30 }

// kernel: gpt_forward.9
= control target key start
LH: loop header
LB: loop body
LE: loop exit
PB: predicated region body
PF: predicated region fallthrough
CT: control target
= control target key end

     0   :  { %s702_s12 = smov 0   ;;  %s704_s13 = smov 0   ;;  %s771_s0 = inlined_call_operand.vmem [shape: bf16[2,4,8,8], index: 0, kind: input, shape index: {}]   ;;  %s772_s1 = inlined_call_operand.vmem [shape: bf16[2,4,8,8], index: 1, kind: input, shape index: {}]   ;;  %s773_s2 = inlined_call_operand.vmem [shape: bf16[2,4,8,8], index: 2, kind: input, shape index: {}]   ;;  %s774_s3 = inlined_call_operand.vmem [shape: bf16[2,4,8,8], index: 3, kind: output, shape index: {}]  }
   0x1   :  { %s706_s14 = smov 0  }
   0x2 LB: > { %s25_s15 = sadd.s32 1, %s676_s13  ;;  %p595_p0 = scmp.ge.s32.totalorder %s680_s14, 1  ;;  %s680_s14 = sphi %s706_s14, %s13_s14   ;;  %s676_s13 = sphi %s704_s13, %s776_s13   ;;  %s672_s12 = sphi %s702_s12, %s775_s12  }
   0x3   : > { %p27_p1 = scmp.ge.s32.totalorder %s25_s15, 2  ;;  %p176_p2 = scmp.lt.s32.totalorder %s680_s14, 3 }
   0x5   : > { %s778_s15 = smov (%p27_p1, %s25_s15), 0  ;;  %p177_p3 = pnand %p595_p0, %p176_p2 }
   0x6   : > { %p216_p4 = scmp.lt.s32.totalorder (!%p177_p3), %s672_s12, 1 }
   0x7   : > { %180 = sbr.rel (%p177_p3) target bundleno = 563 (0x233), region = 32 }
   0xc   : > { %s780_s12 = smov (!%p216_p4, %s672_s12), 1  ;;  %vm255_vm0 = vcmask 64512   ;;  %v336_v12 = vlaneseq  ;;  %vm401_vm2 = vcmask 1043456   ;;  %vm479_vm3 = vcmask 60416  }
   0xd   : > { %s720_s16 = sshll.u32 %s780_s12, 4 }
   0xe   : > { %s228_s19 = scalar_lea.vmem %s772_s1, %s720_s16  ;;  %s223_s22 = scalar_lea.vmem %s771_s0, %s720_s16  ;;  %v337_v13 = vshrl.u32 %v336_v12, 7  ;;  %v342_v14 = vand.u32 127, %v336_v12 }
   0xf   : > { %v247_v0 = vld [vmem:[%s228_s19] sm:$0xf]  ;;  %v249_v1 = vld [vmem:[%s228_s19 + $0x8] sm:$0xf]  ;;  %v250_v2 = vld [vmem:[%s228_s19 + $0xc] sm:$0xf]  ;;  %s233_s25 = scalar_lea.vmem %s773_s2, %s720_s16  ;;  %s241_s28 = scalar_lea.vmem %s774_s3, %s720_s16 }
  0x10   : > { %v260_v3 = vsel %vm255_vm0, %v247_v0, 0  ;;  %v298_v4 = vsel %vm255_vm0, %v249_v1, 0  ;;  %v317_v5 = vsel %vm255_vm0, %v250_v2, 0  ;;  %v248_v6 = vld [vmem:[%s228_s19 + $0x4] sm:$0xf]  ;;  %vm343_vm1 = vcmp.ge.s32.totalorder %v337_v13, %v342_v14 }
  0x11   : > { %269 = vmatpush.bf16.xpose.msra.mxu0 %v260_v3  ;;  %307 = vmatpush.bf16.xpose.msra.mxu2 %v298_v4  ;;  %v279_v7 = vsel %vm255_vm0, %v248_v6, 0  ;;  %v243_v8 = vld [vmem:[%s223_s22] sm:$0xf]  ;;  %v245_v9 = vld [vmem:[%s223_s22 + $0x8] sm:$0xf] }
  0x12   : > { %326 = vmatpush.bf16.xpose.msra.mxu3 %v317_v5  ;;  %288 = vmatpush.bf16.xpose.msra.mxu1 %v279_v7  ;;  %v246_v10 = vld [vmem:[%s223_s22 + $0xc] sm:$0xf]  ;;  %v244_v11 = vld [vmem:[%s223_s22 + $0x4] sm:$0xf]  ;;  %v251_v55 = vld [vmem:[%s233_s25] sm:$0xf] }
  0x13   : > { %v403_v56 = vsel %vm401_vm2, %v251_v55, 0  ;;  %v253_v57 = vld [vmem:[%s233_s25 + $0x8] sm:$0xf]  ;;  %v252_v59 = vld [vmem:[%s233_s25 + $0x4] sm:$0xf] }
  0x14   : > { %v441_v58 = vsel %vm401_vm2, %v253_v57, 0  ;;  %v422_v60 = vsel %vm401_vm2, %v252_v59, 0  ;;  %v254_v61 = vld [vmem:[%s233_s25 + $0xc] sm:$0xf] }
  0x15   : > { %v460_v62 = vsel %vm401_vm2, %v254_v61, 0 }
  0x18   : > { %604 = vmatmul.msk.bf16.vlgmr.msra.gmra.mxu0 %vm255_vm0, %v243_v8  ;;  %606 = vmatmul.msk.bf16.vlgmr.msra.gmra.mxu2 %vm255_vm0, %v245_v9 }
  0x19   : > { %607 = vmatmul.msk.bf16.vlgmr.msra.gmra.mxu3 %vm255_vm0, %v246_v10  ;;  %605 = vmatmul.msk.bf16.vlgmr.msra.gmra.mxu1 %vm255_vm0, %v244_v11 }
  0x1a   : > { %412 = vmatpush.bf16.msrb.mxu0 %v403_v56  ;;  %450 = vmatpush.bf16.msrb.mxu2 %v441_v58 }
  0x1b   : > { %431 = vmatpush.bf16.msrb.mxu1 %v422_v60  ;;  %469 = vmatpush.bf16.msrb.mxu3 %v460_v62 }
  0x95   : > { %v271_v15 = vpop.f32.mrf.mxu0 }
  0x96   : > { %v332_v16 = vmul.f32 0.35355338, %v271_v15  ;;  %v290_v17 = vpop.f32.mrf.mxu1 }
  0x97   : > { %v333_v19 = vmul.f32 0.35355338, %v290_v17 }
  0x98   : > { %v346_v18 = vsel %vm343_vm1, %v332_v16, -1e+30 }
  0x99   : > { %v350_v20 = vsel %vm255_vm0, %v346_v18, -inf  ;;  %v347_v24 = vsel %vm343_vm1, %v333_v19, -1e+30 }
  0x9a   : > { %351 = vmax.xlane.f32.xlu1 %v350_v20  ;;  %v353_v29 = vsel %vm255_vm0, %v347_v24, -inf }
  0x9b   : > { %v309_v21 = vpop.f32.mrf.mxu2 }
  0x9c   : > { %v334_v22 = vmul.f32 0.35355338, %v309_v21  ;;  %v328_v23 = vpop.f32.mrf.mxu3 }
  0x9d   : > { %v273_v25 = vpop.f32.mrf.mxu0  ;;  %v335_v26 = vmul.f32 0.35355338, %v328_v23 }
  0x9e   : > { %v348_v27 = vsel %vm343_vm1, %v334_v22, -1e+30  ;;  %v292_v30 = vpop.f32.mrf.mxu1 }
  0x9f   : > { %v356_v28 = vsel %vm255_vm0, %v348_v27, -inf  ;;  %v349_v31 = vsel %vm343_vm1, %v335_v26, -1e+30 }
  0xa0   : > { %357 = vmax.xlane.f32.xlu0 %v356_v28  ;;  %v359_v34 = vsel %vm255_vm0, %v349_v31, -inf }
  0xa2   : > { %354 = vmax.xlane.f32.xlu1 %v353_v29 }
  0xa3   : > { %v311_v32 = vpop.f32.mrf.mxu2 }
  0xa4   : > { %v330_v33 = vpop.f32.mrf.mxu3 }
  0xa8   : > { %360 = vmax.xlane.f32.xlu0 %v359_v34 }
 0x10d   : > { %v352_v35 = vpop.xlane.xlu1 %351 }
 0x10e   : > { %v362_v36 = vsub.f32 %v346_v18, %v352_v35 }
 0x110   : > { %v366_v37 = vmul.f32 1.442695, %v362_v36 }
 0x112   : > { %642 = vpow2.f32 %v366_v37 }
 0x113   : > { %v358_v38 = vpop.xlane.xlu0 %357 }
 0x114   : > { %v364_v39 = vsub.f32 %v348_v27, %v358_v38 }
 0x115   : > { %v355_v40 = vpop.xlane.xlu1 %354 }
 0x116   : > { %v370_v41 = vmul.f32 1.442695, %v364_v39  ;;  %v363_v42 = vsub.f32 %v347_v24, %v355_v40 }
 0x118   : > { %v643_v43 = vpop.eup %642  ;;  %644 = vpow2.f32 %v370_v41  ;;  %v368_v44 = vmul.f32 1.442695, %v363_v42 }
 0x119   : > { %v374_v45 = vsel %vm255_vm0, %v643_v43, 0.0 }
 0x11a   : > { %646 = vpow2.f32 %v368_v44  ;;  %375 = vadd.xlane.f32.xlu0 %v374_v45 }
 0x11b   : > { %v361_v46 = vpop.xlane.xlu0 %360 }
 0x11c   : > { %v365_v47 = vsub.f32 %v349_v31, %v361_v46 }
 0x11e   : > { %v645_v48 = vpop.eup %644  ;;  %v372_v49 = vmul.f32 1.442695, %v365_v47 }
 0x11f   : > { %v380_v50 = vsel %vm255_vm0, %v645_v48, 0.0 }
 0x120   : > { %v647_v51 = vpop.eup %646  ;;  %648 = vpow2.f32 %v372_v49  ;;  %381 = vadd.xlane.f32.xlu2 %v380_v50 }
 0x121   : > { %v377_v52 = vsel %vm255_vm0, %v647_v51, 0.0 }
 0x122   : > { %378 = vadd.xlane.f32.xlu1 %v377_v52 }
 0x126   : > { %v649_v53 = vpop.eup %648 }
 0x127   : > { %v383_v54 = vsel %vm255_vm0, %v649_v53, 0.0 }
 0x128   : > { %384 = vadd.xlane.f32.xlu2 %v383_v54 }
 0x18d   : > { %v376_v63 = vpop.xlane.xlu0 %375 }
 0x18e   : > { %650 = vrcp.f32 %v376_v63 }
 0x193   : > { %v382_v0 = vpop.xlane.xlu2 %381 }
 0x194   : > { %v651_v1 = vpop.eup %650  ;;  %652 = vrcp.f32 %v382_v0 }
 0x195   : > { %v390_v2 = vmul.f32 %v651_v1, %v643_v43  ;;  %v379_v3 = vpop.xlane.xlu1 %378 }
 0x196   : > { %654 = vrcp.f32 %v379_v3 }
 0x197   : > { %v394_v4 = vpack.c.bf16 %v390_v2, %v390_v2 }
 0x199   : > { %608 = vmatmul.msk.bf16.vlgmr.msrb.gmra.mxu0 %vm255_vm0, %v394_v4 }
 0x19a   : > { %v653_v5 = vpop.eup %652 }
 0x19b   : > { %v392_v6 = vmul.f32 %v653_v5, %v645_v48  ;;  %v385_v7 = vpop.xlane.xlu2 %384 }
 0x19c   : > { %v655_v8 = vpop.eup %654  ;;  %656 = vrcp.f32 %v385_v7 }
 0x19d   : > { %v391_v9 = vmul.f32 %v655_v8, %v647_v51  ;;  %v396_v10 = vpack.c.bf16 %v392_v6, %v392_v6 }
 0x19f   : > { %v395_v11 = vpack.c.bf16 %v391_v9, %v391_v9  ;;  %610 = vmatmul.msk.bf16.vlgmr.msrb.gmra.mxu2 %vm255_vm0, %v396_v10 }
 0x1a1   : > { %609 = vmatmul.msk.bf16.vlgmr.msrb.gmra.mxu1 %vm255_vm0, %v395_v11 }
 0x1a2   : > { %v657_v12 = vpop.eup %656 }
 0x1a3   : > { %v393_v13 = vmul.f32 %v657_v12, %v649_v53 }
 0x1a5   : > { %v397_v14 = vpack.c.bf16 %v393_v13, %v393_v13 }
 0x1a7   : > { %611 = vmatmul.msk.bf16.vlgmr.msrb.gmra.mxu3 %vm255_vm0, %v397_v14 }
 0x216   : > { %v414_v15 = vpop.f32.mrf.mxu0 }
 0x217   : > { %v475_v16 = vpack.c.bf16 %v414_v15, %v414_v15 }
 0x219   : > { %480 = vst.msk [vmem:[%s241_s28] sm:$0xf] %vm479_vm3, %v475_v16 }
 0x21e   : > { %v416_v17 = vpop.f32.mrf.mxu0  ;;  %v433_v18 = vpop.f32.mrf.mxu1 }
 0x21f   : > { %v476_v19 = vpack.c.bf16 %v433_v18, %v433_v18 }
 0x221   : > { %481 = vst.msk [vmem:[%s241_s28 + $0x4] sm:$0xf] %vm479_vm3, %v476_v19 }
 0x222   : > { %v452_v20 = vpop.f32.mrf.mxu2 }
 0x223   : > { %v477_v21 = vpack.c.bf16 %v452_v20, %v452_v20 }
 0x225   : > { %482 = vst.msk [vmem:[%s241_s28 + $0x8] sm:$0xf] %vm479_vm3, %v477_v21 }
 0x226   : > { %v435_v22 = vpop.f32.mrf.mxu1 }
 0x22a   : > { %v454_v23 = vpop.f32.mrf.mxu2  ;;  %v471_v24 = vpop.f32.mrf.mxu3 }
 0x22b   : > { %v478_v25 = vpack.c.bf16 %v471_v24, %v471_v24 }
 0x22d   : > { %483 = vst.msk [vmem:[%s241_s28 + $0xc] sm:$0xf] %vm479_vm3, %v478_v25 }
 0x232   : > { %v473_v26 = vpop.f32.mrf.mxu3 }
 0x233 PF: > { %s13_s14 = sadd.s32 1, %s680_s14   ;;  %s775_s12 = smov %s676_s13 }
 0x234   : > { %p10_p5 = scmp.ge.s32.totalorder %s13_s14, 4   ;;  %s776_s13 = smov %s778_s15 }
 0x236   :  { %12 = sbr.rel (!%p10_p5) target bundleno = 2 (0x2), region = 68 }

// kernel: gpt_forward.8
= control target key start
LH: loop header
LB: loop body
LE: loop exit
PB: predicated region body
PF: predicated region fallthrough
CT: control target
= control target key end

     0   :  { %s431_s18 = smov 0   ;;  %s473_s0 = inlined_call_operand.vmem [shape: bf16[2,8,32], index: 0, kind: input, shape index: {}]   ;;  %s474_s1 = inlined_call_operand.vmem [shape: f32[1,32], index: 1, kind: input, shape index: {}]   ;;  %s475_s2 = inlined_call_operand.vmem [shape: f32[1,32], index: 2, kind: input, shape index: {}]   ;;  %s476_s3 = inlined_call_operand.vmem [shape: bf16[32,96], index: 3, kind: input, shape index: {}]   ;;  %s477_s4 = inlined_call_operand.vmem [shape: f32[1,96], index: 4, kind: input, shape index: {}]   ;;  %s478_s5 = inlined_call_operand.vmem [shape: bf16[2,8,96], index: 5, kind: output, shape index: {}]  }
   0x1 LB: > { %s356_s19 = sadd.s32 4294967295, %s398_s18   ;;  %p360_p0 = scmp.ge.s32.totalorder %s398_s18, 1  ;;  %s398_s18 = sphi %s431_s18, %s15_s18  }
   0x2   : > { %p186_p1 = scmp.lt.s32.totalorder %s398_s18, 3 }
   0x4   : > { %p187_p2 = pnand %p360_p0, %p186_p1 }
   0x5   : > { %p212_p3 = scmp.lt.s32.totalorder (!%p187_p2), %s356_s19, 1 }
   0x6   : > { %190 = sbr.rel (%p187_p2) target bundleno = 421 (0x1a5), region = 40 }
   0xb   : > { %s480_s19 = smov (!%p212_p3, %s356_s19), 1  ;;  %vm225_vm0 = vcmask 261120   ;;  %v400_v3 = vmov 32.0   ;;  %v375_v15 = vld [vmem:[%s476_s3 + $0x8] sm:$0xff]  ;;  %v374_v16 = vld [vmem:[%s476_s3] sm:$0xff]  ;;  %vm301_vm5 = vcmask 781312  }
   0xc   : > { %s361_s20 = sshll.u32 %s480_s19, 2  ;;  %388 = vrcp.f32 %v400_v3  ;;  %293 = vmatpush.bf16.msra.mxu0 %v375_v15  ;;  %v385_v26 = vld [vmem:[%s474_s1] ss:$0 sm:$0xff] }
   0xd   : > { %s215_s23 = scalar_lea.vmem %s473_s0, %s361_s20  ;;  %v386_v29 = vld [vmem:[%s475_s2] ss:$0 sm:$0xff]  ;;  %s219_s11 = scalar_lea.vmem %s478_s5, %s361_s20 }
   0xe   : > { %v221_v0 = vld [vmem:[%s215_s23] sm:$0xf] }
   0xf   : > { %v222_v1 = vunpack.c.l.bf16 %v221_v0  ;;  %v387_v33 = vld [vmem:[%s477_s4] ss:$0 sm:$0xff] }
  0x10   : > { %294 = vmatpush.bf16.msra.mxu0 %v374_v16 }
  0x11   : > { %v226_v2 = vsel %vm225_vm0, %v222_v1, 0.0 }
  0x12   : > { %227 = vadd.xlane.f32.xlu0 %v226_v2  ;;  %v389_v4 = vpop.eup %388 }
  0x13   : > { %v230_v5 = vmul.f32 32.0, %v389_v4  ;;  %vm234_vm1 = vweird.f32 %v389_v4 }
  0x15   : > { %v231_v6 = vsub.f32 1.0, %v230_v5 }
  0x17   : > { %v232_v7 = vmul.f32 %v389_v4, %v231_v6 }
  0x19   : > { %v233_v8 = vadd.f32 %v389_v4, %v232_v7 }
  0x1b   : > { %v235_v9 = vsel %vm234_vm1, %v389_v4, %v233_v8 }
  0x85   : > { %v228_v10 = vpop.xlane.xlu0 %227 }
  0x86   : > { %v236_v11 = vmul.f32 %v235_v9, %v228_v10 }
  0x88   : > { %v237_v12 = vsub.f32 %v222_v1, %v236_v11 }
  0x8a   : > { %v238_v13 = vmul.f32 %v237_v12, %v237_v12 }
  0x8c   : > { %v239_v14 = vsel %vm225_vm0, %v238_v13, 0.0 }
  0x8d   : > { %240 = vadd.xlane.f32.xlu0 %v239_v14 }
 0x100   : > { %v241_v17 = vpop.xlane.xlu0 %240 }
 0x101   : > { %v242_v18 = vmul.f32 %v241_v17, %v235_v9 }
 0x103   : > { %v243_v19 = vadd.f32 1e-05, %v242_v18 }
 0x105   : > { %390 = vrsqrt.f32 %v243_v19  ;;  %vm250_vm3 = vweird.f32 %v243_v19 }
 0x10b   : > { %v391_v20 = vpop.eup %390 }
 0x10c   : > { %v245_v21 = vmul.f32 %v391_v20, %v243_v19  ;;  %vm251_vm2 = vweird.f32 %v391_v20 }
 0x10d   : > { %vm252_vm4 = vmor %vm250_vm3, %vm251_vm2 }
 0x10e   : > { %v246_v22 = vmul.f32 %v391_v20, %v245_v21 }
 0x110   : > { %v247_v23 = vmul.f32 0.5, %v246_v22 }
 0x112   : > { %v248_v24 = vsub.f32 1.5, %v247_v23 }
 0x114   : > { %v249_v25 = vmul.f32 %v391_v20, %v248_v24 }
 0x116   : > { %v253_v27 = vsel %vm252_vm4, %v391_v20, %v249_v25 }
 0x117   : > { %v254_v28 = vmul.f32 %v253_v27, %v237_v12 }
 0x119   : > { %v258_v30 = vmul.f32 %v385_v26, %v254_v28 }
 0x11b   : > { %v262_v31 = vadd.f32 %v386_v29, %v258_v30 }
 0x11d   : > { %v263_v32 = vpack.c.bf16 %v262_v31, %v262_v31 }
 0x11f   : > { %371 = vmatmul.msk.bf16.vlgmr.msra.gmra.mxu0 %vm225_vm0, %v263_v32 }
 0x19c   : > { %v296_v34 = vpop.f32.mrf.mxu0 }
 0x19d   : > { %v297_v35 = vadd.f32 %v387_v33, %v296_v34 }
 0x19f   : > { %v300_v36 = vpack.c.bf16 %v297_v35, %v297_v35 }
 0x1a1   : > { %302 = vst.msk [vmem:[%s219_s11] sm:$0xf] %vm301_vm5, %v300_v36 }
 0x1a4   : > { %v298_v37 = vpop.f32.mrf.mxu0 }
 0x1a5 PF: > { %s15_s18 = sadd.s32 1, %s398_s18  }
 0x1a6   : > { %p12_p4 = scmp.ge.s32.totalorder %s15_s18, 4  }
 0x1a8   :  { %14 = sbr.rel (!%p12_p4) target bundleno = 1 (0x1), region = 70 }

// kernel: gpt_forward.10
= control target key start
LH: loop header
LB: loop body
LE: loop exit
PB: predicated region body
PF: predicated region fallthrough
CT: control target
= control target key end

     0   :  { %s847_s13 = smov 0   ;;  %s929_s0 = inlined_call_operand.vmem [shape: bf16[2,8,32], index: 0, kind: input, shape index: {}]   ;;  %s930_s1 = inlined_call_operand.vmem [shape: bf16[2,8,32], index: 1, kind: input, shape index: {}]   ;;  %s931_s2 = inlined_call_operand.vmem [shape: bf16[32,32], index: 2, kind: input, shape index: {}]   ;;  %s932_s3 = inlined_call_operand.vmem [shape: f32[1,32], index: 3, kind: input, shape index: {}]   ;;  %s933_s4 = inlined_call_operand.vmem [shape: f32[1,32], index: 4, kind: input, shape index: {}]   ;;  %s934_s5 = inlined_call_operand.vmem [shape: f32[1,32], index: 5, kind: input, shape index: {}]   ;;  %s935_s6 = inlined_call_operand.vmem [shape: bf16[32,128], index: 6, kind: input, shape index: {}]   ;;  %s936_s7 = inlined_call_operand.vmem [shape: f32[1,128], index: 7, kind: input, shape index: {}]   ;;  %s937_s8 = inlined_call_operand.vmem [shape: bf16[128,32], index: 8, kind: input, shape index: {}]   ;;  %s938_s9 = inlined_call_operand.vmem [shape: f32[1,32], index: 9, kind: input, shape index: {}]   ;;  %s939_s10 = inlined_call_operand.vmem [shape: bf16[2,8,32], index: 10, kind: output, shape index: {}]  }
   0x1 LB: > { %s687_s14 = sadd.s32 4294967295, %s788_s13   ;;  %p691_p0 = scmp.ge.s32.totalorder %s788_s13, 1  ;;  %s788_s13 = sphi %s847_s13, %s20_s13  }
   0x2   : > { %p320_p1 = scmp.lt.s32.totalorder %s788_s13, 3 }
   0x4   : > { %p321_p2 = pnand %p691_p0, %p320_p1 }
   0x5   : > { %p360_p3 = scmp.lt.s32.totalorder (!%p321_p2), %s687_s14, 1 }
   0x6   : > { %324 = sbr.rel (%p321_p2) target bundleno = 747 (0x2eb), region = 60 }
   0xb   : > { %v748_v0 = vld [vmem:[%s931_s2 + $0x8] sm:$0xff]  ;;  %v747_v1 = vld [vmem:[%s931_s2] sm:$0xff]  ;;  %s941_s14 = smov (!%p360_p3, %s687_s14), 1  ;;  %vm392_vm0 = vcmask 261120   ;;  %v790_v13 = vmov 32.0   ;;  %v758_v43 = vld [vmem:[%s937_s8 + $0x38] sm:$0xff] }
   0xc   : > { %402 = vmatpush.bf16.msra.mxu0 %v748_v0  ;;  %s861_s19 = sshll.u32 %s941_s14, 2  ;;  %v769_v5 = vld [vmem:[%s932_s3] ss:$0 sm:$0xff]  ;;  %774 = vrcp.f32 %v790_v13  ;;  %v750_v25 = vld [vmem:[%s935_s6 + $0x8] sm:$0xff]  ;;  %603 = vmatpush.bf16.msra.mxu2 %v758_v43  ;;  %v757_v44 = vld [vmem:[%s937_s8 + $0x30] sm:$0xff]  ;;  %vm620_vm10 = vcmask 257024  }
   0xd   : > { %s367_s22 = scalar_lea.vmem %s930_s1, %s861_s19  ;;  %s363_s25 = scalar_lea.vmem %s929_s0, %s861_s19  ;;  %v770_v8 = vld [vmem:[%s938_s9] ss:$0 sm:$0xff]  ;;  %490 = vmatpush.bf16.msra.mxu1 %v750_v25  ;;  %v756_v45 = vld [vmem:[%s937_s8 + $0x28] sm:$0xff]  ;;  %v754_v50 = vld [vmem:[%s937_s8 + $0x18] sm:$0xff] }
   0xe   : > { %v375_v2 = vld [vmem:[%s367_s22] sm:$0xf]  ;;  %v753_v53 = vld [vmem:[%s937_s8 + $0x10] sm:$0xff]  ;;  %v752_v57 = vld [vmem:[%s937_s8 + $0x8] sm:$0xff]  ;;  %s371_s22 = scalar_lea.vmem %s939_s10, %s861_s19 }
   0xf   : > { %v373_v3 = vld [vmem:[%s363_s25] sm:$0xf] }
  0x10   : > { %403 = vmatpush.bf16.msra.mxu0 %v747_v1  ;;  %v374_v4 = vunpack.c.l.bf16 %v373_v3  ;;  %v749_v26 = vld [vmem:[%s935_s6] sm:$0xff]  ;;  %604 = vmatpush.bf16.msra.mxu2 %v757_v44 }
  0x11   : > { %491 = vmatpush.bf16.msra.mxu1 %v749_v26  ;;  %v771_v36 = vld [vmem:[%s933_s4] ss:$0 sm:$0xff] }
  0x12   : > { %v775_v14 = vpop.eup %774  ;;  %v772_v39 = vld [vmem:[%s934_s5] ss:$0 sm:$0xff] }
  0x13   : > { %703 = vmatmul.msk.bf16.vlgmr.msra.gmra.mxu0 %vm392_vm0, %v375_v2  ;;  %v421_v15 = vmul.f32 32.0, %v775_v14  ;;  %vm425_vm1 = vweird.f32 %v775_v14  ;;  %v773_v46 = vld [vmem:[%s936_s7] ss:$0 sm:$0xff] }
  0x14   : > { %605 = vmatpush.bf16.msra.mxu2 %v756_v45  ;;  %v755_v47 = vld [vmem:[%s937_s8 + $0x20] sm:$0xff] }
  0x15   : > { %v422_v16 = vsub.f32 1.0, %v421_v15  ;;  %v751_v58 = vld [vmem:[%s937_s8] sm:$0xff] }
  0x17   : > { %v423_v17 = vmul.f32 %v775_v14, %v422_v16 }
  0x18   : > { %606 = vmatpush.bf16.msra.mxu2 %v755_v47 }
  0x19   : > { %v424_v18 = vadd.f32 %v775_v14, %v423_v17 }
  0x1b   : > { %v426_v19 = vsel %vm425_vm1, %v775_v14, %v424_v18 }
  0x1c   : > { %607 = vmatpush.bf16.msra.mxu2 %v754_v50 }
  0x20   : > { %608 = vmatpush.bf16.msra.mxu2 %v753_v53 }
  0x24   : > { %609 = vmatpush.bf16.msra.mxu2 %v752_v57 }
  0x28   : > { %610 = vmatpush.bf16.msra.mxu2 %v751_v58 }
  0x90   : > { %v405_v6 = vpop.f32.mrf.mxu0 }
  0x91   : > { %v409_v7 = vadd.f32 %v405_v6, %v374_v4 }
  0x93   : > { %v414_v9 = vadd.f32 %v769_v5, %v409_v7 }
  0x95   : > { %v459_v10 = vadd.f32 %v770_v8, %v414_v9  ;;  %v417_v11 = vsel %vm392_vm0, %v414_v9, 0.0 }
  0x96   : > { %418 = vadd.xlane.f32.xlu0 %v417_v11 }
  0x97   : > { %460 = vst.msk [vmem:[#allocation2] sm:$0xff] %vm392_vm0, %v459_v10 }
  0x98   : > { %v407_v12 = vpop.f32.mrf.mxu0 }
 0x109   : > { %v419_v20 = vpop.xlane.xlu0 %418 }
 0x10a   : > { %v427_v21 = vmul.f32 %v426_v19, %v419_v20  ;;  %v791_v20 = vmov -1.0  }
 0x10c   : > { %v428_v22 = vsub.f32 %v414_v9, %v427_v21 }
 0x10e   : > { %v429_v23 = vmul.f32 %v428_v22, %v428_v22 }
 0x110   : > { %v430_v24 = vsel %vm392_vm0, %v429_v23, 0.0 }
 0x111   : > { %431 = vadd.xlane.f32.xlu0 %v430_v24 }
 0x184   : > { %v432_v27 = vpop.xlane.xlu0 %431 }
 0x185   : > { %v433_v28 = vmul.f32 %v432_v27, %v426_v19  ;;  %v538_v27 = vld [vmem:[#allocation2] sm:$0xff] }
 0x187   : > { %v434_v29 = vadd.f32 1e-05, %v433_v28 }
 0x189   : > { %776 = vrsqrt.f32 %v434_v29  ;;  %vm441_vm3 = vweird.f32 %v434_v29 }
 0x18f   : > { %v777_v30 = vpop.eup %776 }
 0x190   : > { %v436_v31 = vmul.f32 %v777_v30, %v434_v29  ;;  %vm442_vm2 = vweird.f32 %v777_v30 }
 0x191   : > { %vm443_vm4 = vmor %vm441_vm3, %vm442_vm2 }
 0x192   : > { %v437_v32 = vmul.f32 %v777_v30, %v436_v31 }
 0x194   : > { %v438_v33 = vmul.f32 0.5, %v437_v32 }
 0x196   : > { %v439_v34 = vsub.f32 1.5, %v438_v33 }
 0x198   : > { %v440_v35 = vmul.f32 %v777_v30, %v439_v34 }
 0x19a   : > { %v444_v37 = vsel %vm443_vm4, %v777_v30, %v440_v35 }
 0x19b   : > { %v445_v38 = vmul.f32 %v444_v37, %v428_v22 }
 0x19d   : > { %v449_v40 = vmul.f32 %v771_v36, %v445_v38 }
 0x19f   : > { %v453_v41 = vadd.f32 %v772_v39, %v449_v40 }
 0x1a1   : > { %v454_v42 = vpack.c.bf16 %v453_v41, %v453_v41 }
 0x1a3   : > { %712 = vmatmul.msk.bf16.vlgmr.msra.gmra.mxu1 %vm392_vm0, %v454_v42 }
 0x220   : > { %v493_v48 = vpop.f32.mrf.mxu1 }
 0x221   : > { %v494_v49 = vadd.f32 %v773_v46, %v493_v48 }
 0x223   : > { %v498_v51 = vmul.f32 0.70710677, %v494_v49  ;;  %v497_v23 = vmul.f32 0.5, %v494_v49 }
 0x225   : > { %v501_v52 = vand.u32 2147483647, %v498_v51  ;;  %vm499_vm9 = vcmp.ge.f32.partialorder %v498_v51, 0.0 }
 0x226   : > { %v500_v21 = vsel %vm499_vm9, 1.0, %v791_v20 }
 0x227   : > { %v502_v54 = vmul.f32 0.3275911, %v501_v52  ;;  %v528_v4 = vsub.f32 0.0, %v501_v52 }
 0x228   : > { %v495_v55 = vpop.f32.mrf.mxu1 }
 0x229   : > { %v503_v56 = vadd.f32 1.0, %v502_v54  ;;  %v529_v8 = vmul.f32 %v528_v4, %v501_v52 }
 0x22b   : > { %778 = vrcp.f32 %v503_v56  ;;  %v515_v62 = vand.u32 2147483648, %v503_v56  ;;  %v513_v0 = vand.u32 2147483647, %v503_v56  ;;  %vm509_vm6 = vweird.f32 %v503_v56 }
 0x22c   : > { %v530_v11 = vmul.f32 1.442695, %v529_v8 }
 0x22d   : > { %v516_v2 = vor.u32 1.1754944e-38, %v515_v62  ;;  %vm514_vm8 = vcmp.eq.f32.partialorder %v513_v0, 8.507059e+37 }
 0x22e   : > { %780 = vpow2.f32 %v530_v11 }
 0x231   : > { %v779_v59 = vpop.eup %778 }
 0x232   : > { %v505_v60 = vmul.f32 %v779_v59, %v503_v56  ;;  %vm510_vm5 = vweird.f32 %v779_v59 }
 0x233   : > { %vm511_vm7 = vmor %vm509_vm6, %vm510_vm5 }
 0x234   : > { %v506_v61 = vsub.f32 1.0, %v505_v60  ;;  %v781_v17 = vpop.eup %780 }
 0x236   : > { %v507_v63 = vmul.f32 %v779_v59, %v506_v61 }
 0x238   : > { %v508_v1 = vadd.f32 %v779_v59, %v507_v63 }
 0x23a   : > { %v512_v3 = vsel %vm511_vm7, %v779_v59, %v508_v1 }
 0x23b   : > { %v517_v5 = vsel %vm514_vm8, %v516_v2, %v512_v3 }
 0x23c   : > { %v519_v6 = vmul.f32 1.0614054, %v517_v5 }
 0x23e   : > { %v520_v7 = vadd.f32 -1.4531521, %v519_v6 }
 0x240   : > { %v521_v9 = vmul.f32 %v520_v7, %v517_v5 }
 0x242   : > { %v522_v10 = vadd.f32 1.4214138, %v521_v9 }
 0x244   : > { %v523_v12 = vmul.f32 %v522_v10, %v517_v5 }
 0x246   : > { %v524_v13 = vadd.f32 -0.28449672, %v523_v12 }
 0x248   : > { %v525_v14 = vmul.f32 %v524_v13, %v517_v5 }
 0x24a   : > { %v526_v15 = vadd.f32 0.2548296, %v525_v14 }
 0x24c   : > { %v527_v16 = vmul.f32 %v526_v15, %v517_v5 }
 0x24e   : > { %v532_v18 = vmul.f32 %v781_v17, %v527_v16 }
 0x250   : > { %v533_v19 = vsub.f32 1.0, %v532_v18 }
 0x252   : > { %v534_v22 = vmul.f32 %v533_v19, %v500_v21 }
 0x254   : > { %v535_v24 = vadd.f32 1.0, %v534_v22 }
 0x256   : > { %v536_v25 = vmul.f32 %v535_v24, %v497_v23 }
 0x258   : > { %v537_v26 = vpack.c.bf16 %v536_v25, %v536_v25 }
 0x25a   : > { %611 = vmatmul.bf16.vlgmr.msra.gmra.mxu2 %v537_v26 }
 0x2dd   : > { %v612_v28 = vpop.f32.mrf.mxu2 }
 0x2de   : > { %v616_v29 = vadd.f32 %v612_v28, %v538_v27 }
 0x2e0   : > { %617 = vst.msk [vmem:[#allocation2] sm:$0xff] %vm392_vm0, %v616_v29 }
 0x2e5   : > { %v614_v30 = vpop.f32.mrf.mxu2 }
 0x2e7   : > { %v618_v31 = vld [vmem:[#allocation2] sm:$0xff] }
 0x2e8   : > { %v619_v32 = vpack.c.bf16 %v618_v31, %v618_v31 }
 0x2ea   : > { %621 = vst.msk [vmem:[%s371_s22] sm:$0xf] %vm620_vm10, %v619_v32 }
 0x2eb PF: > { %s20_s13 = sadd.s32 1, %s788_s13  }
 0x2ec   : > { %p17_p4 = scmp.ge.s32.totalorder %s20_s13, 4  }
 0x2ee   :  { %19 = sbr.rel (!%p17_p4) target bundleno = 1 (0x1), region = 93 }

// kernel: gpt_forward.15
= control target key start
LH: loop header
LB: loop body
LE: loop exit
PB: predicated region body
PF: predicated region fallthrough
CT: control target
= control target key end

     0   :  { %s131_s0 = inlined_call_operand.vmem [shape: bf16[2,32], index: 0, kind: input, shape index: {}]   ;;  %s132_s1 = inlined_call_operand.vmem [shape: bf16[32,64], index: 1, kind: input, shape index: {}]   ;;  %s133_s2 = inlined_call_operand.hbm [shape: f32[2,64], index: 2, kind: output, shape index: {}]  }
   0x1   :  { %v75_v0 = vld [vmem:[%s132_s1 + $0x8] sm:$0xff] }
   0x2   :  { %7 = vsyncpa [#allocation3], 0  ;;  %40 = vmatpush.bf16.msra.mxu0 %v75_v0  ;;  %v74_v1 = vld [vmem:[%s132_s1] sm:$0xff]  ;;  %vm30_vm0 = vcmask 261120   ;;  %s103_s15 = smov [#allocation2]   ;;  %s56_s19 = sshll.u32 %s133_s2, 4  ;;  %s57_s19 = int_to_ptr.hbm [resolvable:$true] %s56_s19 }
   0x3   :  { %v13_v2 = vld [vmem:[%s131_s0] sm:$0x1]  ;;  %s54_s16 = sshll.u32 %s103_s15, 4  ;;  %vm47_vm1 = vcmask 517120   ;;  %s55_s16 = int_to_ptr.vmem [resolvable:$true] %s54_s16 }
   0x6   :  { %41 = vmatpush.bf16.msra.mxu0 %v74_v1 }
   0x9   :  { %73 = vmatmul.msk.bf16.vlgmr.msra.gmra.mxu0 %vm30_vm0, %v13_v2 }
  0x86   :  { %v43_v3 = vpop.f32.mrf.mxu0 }
  0x87   :  { %48 = vst.msk [vmem:[#allocation2] sm:$0x3] %vm47_vm1, %v43_v3 }
  0x88   :  { %59 = dma.vmem_to_hbm [thread:$0]  %s55_s16, 32, %s57_s19, [#allocation3]  }
  0x8e   :  { %v45_v4 = vpop.f32.mrf.mxu0 }
  0x8f   :  { %101 = dma.done.wait [#allocation3], 32  }
  0x90   :  { %102 = vsyncadd [#allocation3], 4294967264 }
  0x91   :  { %64 = vsyncpa [#allocation3], 1 }

</bundles_post_ra>
